<compile_context>
chip_gen: v6e
topology: v6e:2x2x1
jax: 0.10.0
libtpu: 0.0.40
codegen_flags: <defaults>
</compile_context>

<pallas_src>
import jax
import jax.numpy as jnp
from jax.experimental import pallas as pl
from jax.experimental.pallas import tpu as pltpu

# ----------------------------- config -------------------------------------
B = 2              # graphs per batched graph (per mut / wild pass)
N = 16             # nodes per graph
INPUT_DIM = 8      # param['input_dim']
H = 32             # param['prot_hidden_dim']
NUM_LAYERS = 2     # param['prot_num_layers']
K = 64             # param['num_embeddings']
CC = 0.25          # param['commitment_cost']
BN_EPS = 1e-5
GN = 2 * B * N     # nodes in the stacked [mut, wild] slab = 64
H2 = 2 * H         # 64
OUT_LANES = 128    # lane-dense packed output width

# ------------- packed parameter slab layout (SLAB_ROWS x 64 lanes, f32) ----------------
# All row offsets are multiples of 8 (sublane-tile aligned static slices).
R_WC0 = 0                       # (3*INPUT_DIM, H) layer-0 per-edge-type GraphConv weights
R_WF0 = R_WC0 + 3 * INPUT_DIM   # (H, H)           layer-0 FC weight (BN scale folded)
R_BF0 = R_WF0 + H               # (1, H)           layer-0 effective bias (conv biases + BN folded)
R_WC1 = 64                      # (3*H, H)         layer-1 per-edge-type GraphConv weights
R_WF1 = R_WC1 + 3 * H           # (H, H)
R_BF1 = R_WF1 + H               # (1, H)
R_EMB = 200                     # (K, H)           row-normalized codebook
R_POOL = R_EMB + K              # (2B, GN)         per-graph mean-pooling matrix (constant)
R_W1 = 272                      # (2*H2, H2)       MLP layer-1 weight, [mut-half ; wild-half]
R_B1 = R_W1 + 2 * H2            # (1, H2)
R_W2 = 408                      # (H2, H2)
R_B2 = R_W2 + H2                # (1, H2)
R_W3 = 480                      # (H2, H2)
R_B3 = R_W3 + H2                # (1, H2)
R_W4P = 552                     # (H2, 1)          w4 @ wp  (project folded into last Linear)
R_B4P = R_W4P + H2              # (1, 1)           b4 @ wp
SLAB_ROWS = 624                 # 624 * 64 * 4 B ~= 156 KB


# =========================== fused Pallas kernel ============================

def fused_ddg_kernel(a_ref, x_ref, slab_ref, lab_ref, out_ref, xw_ref):
    """Entire ddG forward for one (mut, wild, labels) sample.

    a_ref    : (1, GN, 3*GN)  block-diag sym-normalized adjacency, edge types side by side
    x_ref    : (1, GN, Din)   node features (mut graphs then wild graphs)
    slab_ref : (SLAB_ROWS, H2) packed weights / biases / codebook / pooling (layout above)
    lab_ref  : (1, B, 1)      labels
    out_ref  : (1, B, 128)    lane 0 = pred, lane 1 = total loss
    xw_ref   : (3*GN, H)      VMEM scratch for the per-edge-type X @ Wc_t stack
    """
    f32 = jnp.float32

    # ---- Encoder layer: agg = sum_t Ahat_t @ X @ Wc_t ; ReLU(FC(agg)) (conv bias + eval-BN folded)
    def enc_layer(xin, r_wc, r_wf, r_bf, din):
        for t in range(3):                                    # 3 independent small matmuls
            wct = slab_ref[r_wc + t * din: r_wc + (t + 1) * din, 0:H]
            xw_ref[t * GN:(t + 1) * GN, :] = jnp.dot(xin, wct, preferred_element_type=f32)
        # one lane-dense (GN, 3GN) @ (3GN, H) aggregation; adjacency is read per layer so
        # its vreg live range stays local (no kernel-wide hoist).
        agg = jnp.dot(a_ref[0], xw_ref[...], preferred_element_type=f32)
        wf = slab_ref[r_wf:r_wf + H, 0:H]
        bf = slab_ref[r_bf:r_bf + 1, 0:H]
        return jnp.maximum(jnp.dot(agg, wf, preferred_element_type=f32) + bf, 0.0)

    h = enc_layer(x_ref[0], R_WC0, R_WF0, R_BF0, INPUT_DIM)   # dropout (eval) = identity
    h = enc_layer(h, R_WC1, R_WF1, R_BF1, H)                  # (GN, H) encoder output

    # ---- VectorQuantizer: unit-norm rows  =>  argmin L2 == argmax cosine
    ss = jnp.sum(h * h, axis=-1, keepdims=True)
    xq = h * jax.lax.rsqrt(jnp.maximum(ss, 1e-24))            # F.normalize, eps on the norm (1e-12)
    e = slab_ref[R_EMB:R_EMB + K, 0:H]                        # (K, H) pre-normalized codebook
    cross = jax.lax.dot_general(xq, e, (((1,), (1,)), ((), ())),
                                preferred_element_type=f32)   # (GN, K) cosine similarities
    cmax = jnp.max(cross, axis=1, keepdims=True)
    iota = jax.lax.broadcasted_iota(jnp.int32, cross.shape, 1)
    idx = jnp.min(jnp.where(cross == cmax, iota, K), axis=1, keepdims=True)   # first argmax
    q = jnp.dot((iota == idx).astype(f32), e, preferred_element_type=f32)     # quantized z (GN, H)
    # ||q - xq||^2 = 2 - 2*cos (both rows unit norm); summed over ALL 2*B*N nodes.
    vq_sum = 2.0 * GN - 2.0 * jnp.sum(cmax)

    # ---- dgl.mean_nodes of cat([h, z]) per graph, then MLP head
    hq = jnp.concatenate([h, q], axis=1)                      # (GN, 2H) single lane concat
    pool = slab_ref[R_POOL:R_POOL + 2 * B, 0:GN]              # constant per-graph mean masks
    pooled = jnp.dot(pool, hq, preferred_element_type=f32)    # (2B, 2H): [mut graphs ; wild graphs]
    pm, pw = pooled[0:B, :], pooled[B:2 * B, :]
    a = (jnp.dot(pm, slab_ref[R_W1:R_W1 + H2, 0:H2], preferred_element_type=f32)
         + jnp.dot(pw, slab_ref[R_W1 + H2:R_W1 + 2 * H2, 0:H2], preferred_element_type=f32)
         + slab_ref[R_B1:R_B1 + 1, 0:H2])
    a = jnp.maximum(a, 0.0)
    a = jnp.maximum(jnp.dot(a, slab_ref[R_W2:R_W2 + H2, 0:H2], preferred_element_type=f32)
                    + slab_ref[R_B2:R_B2 + 1, 0:H2], 0.0)
    a = jnp.maximum(jnp.dot(a, slab_ref[R_W3:R_W3 + H2, 0:H2], preferred_element_type=f32)
                    + slab_ref[R_B3:R_B3 + 1, 0:H2], 0.0)
    # last Linear(2H,2H) + bias-free project Linear(2H,1) folded: pred = a @ (w4 @ wp) + b4 @ wp
    pred = (jnp.dot(a, slab_ref[R_W4P:R_W4P + H2, 0:1], preferred_element_type=f32)
            + slab_ref[R_B4P:R_B4P + 1, 0:1])                 # (B, 1)

    # ---- losses: nn.MSELoss(pred, labels) + (z_q_loss_mut + z_q_loss_wild)
    dl = pred - lab_ref[0]
    mse = jnp.sum(dl * dl) / B
    loss = mse + (1.0 + CC) * vq_sum / (B * N * H)            # per-pass mean reduction, summed passes

    # ---- single lane-dense packed output tile: lane 0 = pred, lane 1 = loss
    lane = jax.lax.broadcasted_iota(jnp.int32, (B, OUT_LANES), 1)
    out_ref[0] = jnp.where(lane == 0, pred, jnp.where(lane == 1, loss, 0.0))


# ============================ wrappers =====================================

def ddg_forward_batched(a_horiz, x_nodes, param_slab, labels):
    """S independent (mut, wild, labels) forwards in ONE pallas_call.

    a_horiz : (S, GN, 3*GN)   x_nodes : (S, GN, INPUT_DIM)
    param_slab : (SLAB_ROWS, H2)   labels : (S, B, 1)
    returns : pred (S, B, 1), loss (S,)
    """
    S = a_horiz.shape[0]
    out = pl.pallas_call(
        fused_ddg_kernel,
        out_shape=jax.ShapeDtypeStruct((S, B, OUT_LANES), jnp.float32),
        grid_spec=pltpu.PrefetchScalarGridSpec(
            num_scalar_prefetch=0,
            grid=(S,),
            in_specs=[
                pl.BlockSpec((1, GN, 3 * GN), lambda s: (s, 0, 0)),
                pl.BlockSpec((1, GN, INPUT_DIM), lambda s: (s, 0, 0)),
                pl.BlockSpec((SLAB_ROWS, H2), lambda s: (0, 0)),   # weights DMA'd once, resident
                pl.BlockSpec((1, B, 1), lambda s: (s, 0, 0)),
            ],
            out_specs=pl.BlockSpec((1, B, OUT_LANES), lambda s: (s, 0, 0)),
            scratch_shapes=[pltpu.VMEM((3 * GN, H), jnp.float32)],
        ),
        compiler_params=pltpu.CompilerParams(
            dimension_semantics=("parallel",)),   # v7x: sample axis splits across both TensorCores
    )(a_horiz, x_nodes, param_slab, labels)
    return out[:, :, 0:1], out[:, 0, 1]


def ddg_forward(ahat_mut, x_mut, ahat_wild, x_wild, labels, param_slab):
    """Single-sample convenience wrapper matching ddG.forward(mut_graph, wild_graph, labels)."""
    a = build_a_horiz(ahat_mut, ahat_wild)[None]
    x = jnp.concatenate([x_mut, x_wild], axis=0).reshape(1, GN, INPUT_DIM)
    lab = labels.astype(jnp.float32)[None, :, None]
    pred, loss = ddg_forward_batched(a, x, param_slab, lab)
    return pred[0], loss[0]


# ============================ setup / glue ==================================

def build_a_horiz(ahat_mut, ahat_wild):
    """Block-diagonalize per-graph adjacencies (graph order: mut0..mutB-1, wild0..wildB-1)
    and lay the 3 edge types side by side -> (GN, 3*GN) = [A_SEQ | A_STR_KNN | A_STR_DIS]."""
    ahat = jnp.concatenate([ahat_mut, ahat_wild], axis=0)        # (2B, 3, N, N)
    ng = ahat.shape[0]
    a_t = jnp.transpose(ahat, (1, 0, 2, 3))                      # (3, 2B, N, N)
    eye = jnp.eye(ng, dtype=ahat.dtype)
    big = eye[None, :, :, None, None] * a_t[:, :, None, :, :]    # (3, 2B, 2B, N, N)
    big = big.transpose(0, 1, 3, 2, 4).reshape(3, ng * N, ng * N)
    return big.transpose(1, 0, 2).reshape(ng * N, 3 * ng * N)


def pool_matrix():
    """(2B, GN) per-graph mean-pooling masks: rows 0..B-1 mut graphs, B..2B-1 wild graphs."""
    r = jnp.arange(2 * B)[:, None]
    c = jnp.arange(GN)[None, :]
    return jnp.where((c >= r * N) & (c < (r + 1) * N), 1.0 / N, 0.0).astype(jnp.float32)


def make_graph(key):
    """Random undirected graphs per edge type -> symmetrically-normalized adjacency."""
    a = (jax.random.uniform(key, (B, 3, N, N)) < 0.3).astype(jnp.float32)
    a = jnp.maximum(a, jnp.swapaxes(a, -1, -2))                  # symmetrize
    a = jnp.maximum(a, jnp.eye(N, dtype=jnp.float32)[None, None])  # self loops (no 0-degree)
    deg = jnp.sum(a, axis=-1)
    dinv = 1.0 / jnp.sqrt(deg)
    return a * dinv[..., :, None] * dinv[..., None, :]           # D^-1/2 A D^-1/2


def init_params(key):
    ks = iter(jax.random.split(key, 20))
    s = 0.1
    # Eval-mode BatchNorm with default buffers: positive scale 1/sqrt(1+eps) (commutes with ReLU),
    # zero shift -> fold into the FC weight/bias.
    bn_scale = jnp.float32(1.0) / jnp.sqrt(jnp.float32(1.0 + BN_EPS))
    enc = []
    din = INPUT_DIM
    for _ in range(NUM_LAYERS):
        wconv = s * jax.random.normal(next(ks), (3, din, H), jnp.float32)
        bconv = s * jax.random.normal(next(ks), (3, H), jnp.float32)
        wfc = s * jax.random.normal(next(ks), (H, H), jnp.float32)
        bfc = s * jax.random.normal(next(ks), (1, H), jnp.float32)
        bconv_sum = jnp.sum(bconv, axis=0, keepdims=True)        # HeteroGraphConv 'sum' of biases
        enc.append({
            'wconv': wconv,
            'wfc_eff': wfc * bn_scale,
            'b_eff': (bconv_sum @ wfc + bfc) * bn_scale,
        })
        din = H
    emb = jax.random.normal(next(ks), (K, H), jnp.float32)
    # Codebook row-normalized once (the model only ever uses the normalized rows).
    emb_n = emb / jnp.maximum(jnp.sqrt(jnp.sum(emb * emb, axis=-1, keepdims=True)), 1e-12)
    mlp = {
        'w1': s * jax.random.normal(next(ks), (4 * H, 2 * H), jnp.float32),  # [h_mut,z_mut,h_wild,z_wild]
        'b1': s * jax.random.normal(next(ks), (1, 2 * H), jnp.float32),
        'w2': s * jax.random.normal(next(ks), (2 * H, 2 * H), jnp.float32),
        'b2': s * jax.random.normal(next(ks), (1, 2 * H), jnp.float32),
        'w3': s * jax.random.normal(next(ks), (2 * H, 2 * H), jnp.float32),
        'b3': s * jax.random.normal(next(ks), (1, 2 * H), jnp.float32),
        'w4': s * jax.random.normal(next(ks), (2 * H, 2 * H), jnp.float32),
        'b4': s * jax.random.normal(next(ks), (1, 2 * H), jnp.float32),
        'wp': s * jax.random.normal(next(ks), (2 * H, 1), jnp.float32),      # project, no bias
    }
    return {'enc': enc, 'emb_n': emb_n, 'mlp': mlp}


def pack_params(params):
    """Pack every weight / bias / codebook / pooling constant into one (624, 64) f32 slab."""
    e0, e1 = params['enc']
    m = params['mlp']
    slab = jnp.zeros((SLAB_ROWS, H2), jnp.float32)

    def put(sl, r, arr):
        return sl.at[r:r + arr.shape[0], 0:arr.shape[1]].set(arr)

    slab = put(slab, R_WC0, e0['wconv'].reshape(3 * INPUT_DIM, H))
    slab = put(slab, R_WF0, e0['wfc_eff'])
    slab = put(slab, R_BF0, e0['b_eff'])
    slab = put(slab, R_WC1, e1['wconv'].reshape(3 * H, H))
    slab = put(slab, R_WF1, e1['wfc_eff'])
    slab = put(slab, R_BF1, e1['b_eff'])
    slab = put(slab, R_EMB, params['emb_n'])
    slab = put(slab, R_POOL, pool_matrix())
    slab = put(slab, R_W1, m['w1'])
    slab = put(slab, R_B1, m['b1'])
    slab = put(slab, R_W2, m['w2'])
    slab = put(slab, R_B2, m['b2'])
    slab = put(slab, R_W3, m['w3'])
    slab = put(slab, R_B3, m['b3'])
    slab = put(slab, R_W4P, m['w4'] @ m['wp'])   # fold the bias-free project into the last Linear
    slab = put(slab, R_B4P, m['b4'] @ m['wp'])
    return slab


if __name__ == "__main__":
    S = 2   # independent (mut, wild, labels) samples batched behind the parallel grid axis
    root = jax.random.PRNGKey(0)
    k_par, k_data = jax.random.split(root)

    params = init_params(k_par)
    param_slab = pack_params(params)

    a_l, x_l, lab_l = [], [], []
    for k in jax.random.split(k_data, S):
        kgm, kgw, kxm, kxw, klab = jax.random.split(k, 5)
        ahat_mut, ahat_wild = make_graph(kgm), make_graph(kgw)
        x_mut = jax.random.normal(kxm, (B, N, INPUT_DIM), jnp.float32)
        x_wild = jax.random.normal(kxw, (B, N, INPUT_DIM), jnp.float32)
        labels = jax.random.normal(klab, (B,), jnp.float32)
        a_l.append(build_a_horiz(ahat_mut, ahat_wild))
        x_l.append(jnp.concatenate([x_mut, x_wild], axis=0).reshape(GN, INPUT_DIM))
        lab_l.append(labels[:, None])
    a_all = jnp.stack(a_l)        # (S, GN, 3*GN)
    x_all = jnp.stack(x_l)        # (S, GN, INPUT_DIM)
    lab_all = jnp.stack(lab_l)    # (S, B, 1)

    fwd = jax.jit(ddg_forward_batched)
    pred, loss = jax.block_until_ready(fwd(a_all, x_all, param_slab, lab_all))

    assert pred.shape == (S, B, 1) and loss.shape == (S,)
    assert jnp.isfinite(pred).all() and jnp.isfinite(loss).all()
    print("KERNEL_OK")
</pallas_src>

<mosaic_0001>
module attributes {stable_mosaic.version = 11 : i64} {
  func.func @fused_ddg_kernel(%arg0: i32, %arg1: memref<1x64x192xf32, #tpu.memory_space<vmem>>, %arg2: memref<1x64x8xf32, #tpu.memory_space<vmem>>, %arg3: memref<624x64xf32, #tpu.memory_space<vmem>>, %arg4: memref<1x2x1xf32, #tpu.memory_space<vmem>>, %arg5: memref<1x2x128xf32, #tpu.memory_space<vmem>>, %arg6: memref<192x32xf32, #tpu.memory_space<vmem>>) attributes {dimension_semantics = [#tpu.dimension_semantics<parallel>], iteration_bounds = array<i64: 2>, scalar_prefetch = 0 : i64, scratch_operands = 1 : i64, tpu.core_type = #tpu.core_type<tc>, window_params = [{transform_indices = @transform_0, window_bounds = array<i64: 1, 64, 192>}, {transform_indices = @transform_1, window_bounds = array<i64: 1, 64, 8>}, {pipeline_mode = #tpu.pipeline_mode<synchronous>, transform_indices = @transform_2, window_bounds = array<i64: 624, 64>}, {transform_indices = @transform_3, window_bounds = array<i64: 1, 2, 1>}, {transform_indices = @transform_4, window_bounds = array<i64: 1, 2, 128>}]} {
    %c0 = arith.constant 0 : index
    %c0_0 = arith.constant 0 : index
    %c0_1 = arith.constant 0 : index
    %0 = vector.load %arg2[%c0, %c0_0, %c0_1] : memref<1x64x8xf32, #tpu.memory_space<vmem>>, vector<1x64x8xf32>
    %1 = vector.shape_cast %0 : vector<1x64x8xf32> to vector<64x8xf32>
    %c0_2 = arith.constant 0 : index
    %c0_3 = arith.constant 0 : index
    %2 = vector.load %arg3[%c0_2, %c0_3] : memref<624x64xf32, #tpu.memory_space<vmem>>, vector<8x32xf32>
    %cst = arith.constant dense<0.000000e+00> : vector<64x32xf32>
    %3 = tpu.matmul %1, %2, %cst {dimension_numbers = #tpu.dot_dimension_numbers<[1], [0], [0], [1], [0, 0, 1, 1], [], []>} : vector<64x8xf32>, vector<8x32xf32>, vector<64x32xf32> -> vector<64x32xf32>
    %c0_4 = arith.constant 0 : index
    %c0_5 = arith.constant 0 : index
    %4 = vector.load %arg6[%c0_4, %c0_5] : memref<192x32xf32, #tpu.memory_space<vmem>>, vector<64x32xf32>
    tpu.vector_store %arg6[%c0_4, %c0_5], %3 {strides = array<i32>} : memref<192x32xf32, #tpu.memory_space<vmem>>, vector<64x32xf32>,
    %c8 = arith.constant 8 : index
    %c0_6 = arith.constant 0 : index
    %5 = vector.load %arg3[%c8, %c0_6] : memref<624x64xf32, #tpu.memory_space<vmem>>, vector<8x32xf32>
    %cst_7 = arith.constant dense<0.000000e+00> : vector<64x32xf32>
    %6 = tpu.matmul %1, %5, %cst_7 {dimension_numbers = #tpu.dot_dimension_numbers<[1], [0], [0], [1], [0, 0, 1, 1], [], []>} : vector<64x8xf32>, vector<8x32xf32>, vector<64x32xf32> -> vector<64x32xf32>
    %c64 = arith.constant 64 : index
    %c0_8 = arith.constant 0 : index
    %7 = vector.load %arg6[%c64, %c0_8] : memref<192x32xf32, #tpu.memory_space<vmem>>, vector<64x32xf32>
    tpu.vector_store %arg6[%c64, %c0_8], %6 {strides = array<i32>} : memref<192x32xf32, #tpu.memory_space<vmem>>, vector<64x32xf32>,
    %c16 = arith.constant 16 : index
    %c0_9 = arith.constant 0 : index
    %8 = vector.load %arg3[%c16, %c0_9] : memref<624x64xf32, #tpu.memory_space<vmem>>, vector<8x32xf32>
    %cst_10 = arith.constant dense<0.000000e+00> : vector<64x32xf32>
    %9 = tpu.matmul %1, %8, %cst_10 {dimension_numbers = #tpu.dot_dimension_numbers<[1], [0], [0], [1], [0, 0, 1, 1], [], []>} : vector<64x8xf32>, vector<8x32xf32>, vector<64x32xf32> -> vector<64x32xf32>
    %c128 = arith.constant 128 : index
    %c0_11 = arith.constant 0 : index
    %10 = vector.load %arg6[%c128, %c0_11] : memref<192x32xf32, #tpu.memory_space<vmem>>, vector<64x32xf32>
    tpu.vector_store %arg6[%c128, %c0_11], %9 {strides = array<i32>} : memref<192x32xf32, #tpu.memory_space<vmem>>, vector<64x32xf32>,
    %c0_12 = arith.constant 0 : index
    %c0_13 = arith.constant 0 : index
    %c0_14 = arith.constant 0 : index
    %11 = vector.load %arg1[%c0_12, %c0_13, %c0_14] : memref<1x64x192xf32, #tpu.memory_space<vmem>>, vector<1x64x192xf32>
    %12 = vector.shape_cast %11 : vector<1x64x192xf32> to vector<64x192xf32>
    %c0_15 = arith.constant 0 : index
    %c0_16 = arith.constant 0 : index
    %13 = vector.load %arg6[%c0_15, %c0_16] : memref<192x32xf32, #tpu.memory_space<vmem>>, vector<192x32xf32>
    %cst_17 = arith.constant dense<0.000000e+00> : vector<64x32xf32>
    %14 = tpu.matmul %12, %13, %cst_17 {dimension_numbers = #tpu.dot_dimension_numbers<[1], [0], [0], [1], [0, 0, 1, 1], [], []>} : vector<64x192xf32>, vector<192x32xf32>, vector<64x32xf32> -> vector<64x32xf32>
    %c24 = arith.constant 24 : index
    %c0_18 = arith.constant 0 : index
    %15 = vector.load %arg3[%c24, %c0_18] : memref<624x64xf32, #tpu.memory_space<vmem>>, vector<32x32xf32>
    %c56 = arith.constant 56 : index
    %c0_19 = arith.constant 0 : index
    %16 = vector.load %arg3[%c56, %c0_19] : memref<624x64xf32, #tpu.memory_space<vmem>>, vector<1x32xf32>
    %cst_20 = arith.constant dense<0.000000e+00> : vector<64x32xf32>
    %17 = tpu.matmul %14, %15, %cst_20 {dimension_numbers = #tpu.dot_dimension_numbers<[1], [0], [0], [1], [0, 0, 1, 1], [], []>} : vector<64x32xf32>, vector<32x32xf32>, vector<64x32xf32> -> vector<64x32xf32>
    %18 = vector.broadcast %16 : vector<1x32xf32> to vector<64x32xf32>
    %19 = arith.addf %17, %18 : vector<64x32xf32>
    %cst_21 = arith.constant 0.000000e+00 : f32
    %20 = vector.broadcast %cst_21 : f32 to vector<64x32xf32>
    %21 = arith.maximumf %19, %20 : vector<64x32xf32>
    %c64_22 = arith.constant 64 : index
    %c0_23 = arith.constant 0 : index
    %22 = vector.load %arg3[%c64_22, %c0_23] : memref<624x64xf32, #tpu.memory_space<vmem>>, vector<32x32xf32>
    %cst_24 = arith.constant dense<0.000000e+00> : vector<64x32xf32>
    %23 = tpu.matmul %21, %22, %cst_24 {dimension_numbers = #tpu.dot_dimension_numbers<[1], [0], [0], [1], [0, 0, 1, 1], [], []>} : vector<64x32xf32>, vector<32x32xf32>, vector<64x32xf32> -> vector<64x32xf32>
    %c0_25 = arith.constant 0 : index
    %c0_26 = arith.constant 0 : index
    %24 = vector.load %arg6[%c0_25, %c0_26] : memref<192x32xf32, #tpu.memory_space<vmem>>, vector<64x32xf32>
    tpu.vector_store %arg6[%c0_25, %c0_26], %23 {strides = array<i32>} : memref<192x32xf32, #tpu.memory_space<vmem>>, vector<64x32xf32>,
    %c96 = arith.constant 96 : index
    %c0_27 = arith.constant 0 : index
    %25 = vector.load %arg3[%c96, %c0_27] : memref<624x64xf32, #tpu.memory_space<vmem>>, vector<32x32xf32>
    %cst_28 = arith.constant dense<0.000000e+00> : vector<64x32xf32>
    %26 = tpu.matmul %21, %25, %cst_28 {dimension_numbers = #tpu.dot_dimension_numbers<[1], [0], [0], [1], [0, 0, 1, 1], [], []>} : vector<64x32xf32>, vector<32x32xf32>, vector<64x32xf32> -> vector<64x32xf32>
    %c64_29 = arith.constant 64 : index
    %c0_30 = arith.constant 0 : index
    %27 = vector.load %arg6[%c64_29, %c0_30] : memref<192x32xf32, #tpu.memory_space<vmem>>, vector<64x32xf32>
    tpu.vector_store %arg6[%c64_29, %c0_30], %26 {strides = array<i32>} : memref<192x32xf32, #tpu.memory_space<vmem>>, vector<64x32xf32>,
    %c128_31 = arith.constant 128 : index
    %c0_32 = arith.constant 0 : index
    %28 = vector.load %arg3[%c128_31, %c0_32] : memref<624x64xf32, #tpu.memory_space<vmem>>, vector<32x32xf32>
    %cst_33 = arith.constant dense<0.000000e+00> : vector<64x32xf32>
    %29 = tpu.matmul %21, %28, %cst_33 {dimension_numbers = #tpu.dot_dimension_numbers<[1], [0], [0], [1], [0, 0, 1, 1], [], []>} : vector<64x32xf32>, vector<32x32xf32>, vector<64x32xf32> -> vector<64x32xf32>
    %c128_34 = arith.constant 128 : index
    %c0_35 = arith.constant 0 : index
    %30 = vector.load %arg6[%c128_34, %c0_35] : memref<192x32xf32, #tpu.memory_space<vmem>>, vector<64x32xf32>
    tpu.vector_store %arg6[%c128_34, %c0_35], %29 {strides = array<i32>} : memref<192x32xf32, #tpu.memory_space<vmem>>, vector<64x32xf32>,
    %c0_36 = arith.constant 0 : index
    %c0_37 = arith.constant 0 : index
    %c0_38 = arith.constant 0 : index
    %31 = vector.load %arg1[%c0_36, %c0_37, %c0_38] : memref<1x64x192xf32, #tpu.memory_space<vmem>>, vector<1x64x192xf32>
    %32 = vector.shape_cast %31 : vector<1x64x192xf32> to vector<64x192xf32>
    %c0_39 = arith.constant 0 : index
    %c0_40 = arith.constant 0 : index
    %33 = vector.load %arg6[%c0_39, %c0_40] : memref<192x32xf32, #tpu.memory_space<vmem>>, vector<192x32xf32>
    %cst_41 = arith.constant dense<0.000000e+00> : vector<64x32xf32>
    %34 = tpu.matmul %32, %33, %cst_41 {dimension_numbers = #tpu.dot_dimension_numbers<[1], [0], [0], [1], [0, 0, 1, 1], [], []>} : vector<64x192xf32>, vector<192x32xf32>, vector<64x32xf32> -> vector<64x32xf32>
    %c160 = arith.constant 160 : index
    %c0_42 = arith.constant 0 : index
    %35 = vector.load %arg3[%c160, %c0_42] : memref<624x64xf32, #tpu.memory_space<vmem>>, vector<32x32xf32>
    %c192 = arith.constant 192 : index
    %c0_43 = arith.constant 0 : index
    %36 = vector.load %arg3[%c192, %c0_43] : memref<624x64xf32, #tpu.memory_space<vmem>>, vector<1x32xf32>
    %cst_44 = arith.constant dense<0.000000e+00> : vector<64x32xf32>
    %37 = tpu.matmul %34, %35, %cst_44 {dimension_numbers = #tpu.dot_dimension_numbers<[1], [0], [0], [1], [0, 0, 1, 1], [], []>} : vector<64x32xf32>, vector<32x32xf32>, vector<64x32xf32> -> vector<64x32xf32>
    %38 = vector.broadcast %36 : vector<1x32xf32> to vector<64x32xf32>
    %39 = arith.addf %37, %38 : vector<64x32xf32>
    %cst_45 = arith.constant 0.000000e+00 : f32
    %40 = vector.broadcast %cst_45 : f32 to vector<64x32xf32>
    %41 = arith.maximumf %39, %40 : vector<64x32xf32>
    %42 = arith.mulf %41, %41 : vector<64x32xf32>
    %cst_46 = arith.constant dense<0.000000e+00> : vector<64xf32>
    %43 = vector.multi_reduction <add>, %42, %cst_46 [1] : vector<64x32xf32> to vector<64xf32>
    %44 = vector.shape_cast %43 : vector<64xf32> to vector<64x1xf32>
    %cst_47 = arith.constant 1.000000e-24 : f32
    %45 = vector.broadcast %cst_47 : f32 to vector<64x1xf32>
    %46 = arith.maximumf %44, %45 : vector<64x1xf32>
    %47 = math.rsqrt %46 : vector<64x1xf32>
    %48 = vector.broadcast %47 : vector<64x1xf32> to vector<64x32xf32>
    %49 = arith.mulf %41, %48 : vector<64x32xf32>
    %c200 = arith.constant 200 : index
    %c0_48 = arith.constant 0 : index
    %50 = vector.load %arg3[%c200, %c0_48] : memref<624x64xf32, #tpu.memory_space<vmem>>, vector<64x32xf32>
    %cst_49 = arith.constant dense<0.000000e+00> : vector<64x64xf32>
    %51 = tpu.matmul %49, %50, %cst_49 {dimension_numbers = #tpu.dot_dimension_numbers<[1], [1], [0], [0], [0, 0, 1, 0], [], []>} : vector<64x32xf32>, vector<64x32xf32>, vector<64x64xf32> -> vector<64x64xf32>
    %cst_50 = arith.constant dense<0xFF800000> : vector<64xf32>
    %52 = vector.multi_reduction <maximumf>, %51, %cst_50 [1] : vector<64x64xf32> to vector<64xf32>
    %53 = vector.shape_cast %52 : vector<64xf32> to vector<64x1xf32>
    %54 = tpu.iota {dimensions = array<i32: 1>} : vector<64x64xi32>
    %55 = vector.broadcast %53 : vector<64x1xf32> to vector<64x64xf32>
    %56 = arith.cmpf oeq, %51, %55 : vector<64x64xf32>
    %c64_i32 = arith.constant 64 : i32
    %57 = vector.broadcast %c64_i32 : i32 to vector<64x64xi32>
    %58 = arith.select %56, %54, %57 : vector<64x64xi1>, vector<64x64xi32>
    %cst_51 = arith.constant dense<2147483647> : vector<64xi32>
    %59 = vector.multi_reduction <minsi>, %58, %cst_51 [1] : vector<64x64xi32> to vector<64xi32>
    %60 = vector.shape_cast %59 : vector<64xi32> to vector<64x1xi32>
    %61 = vector.broadcast %60 : vector<64x1xi32> to vector<64x64xi32>
    %62 = arith.cmpi eq, %54, %61 : vector<64x64xi32>
    %63 = arith.extui %62 : vector<64x64xi1> to vector<64x64xi32>
    %64 = arith.sitofp %63 : vector<64x64xi32> to vector<64x64xf32>
    %cst_52 = arith.constant dense<0.000000e+00> : vector<64x32xf32>
    %65 = tpu.matmul %64, %50, %cst_52 {dimension_numbers = #tpu.dot_dimension_numbers<[1], [0], [0], [1], [0, 0, 1, 1], [], []>} : vector<64x64xf32>, vector<64x32xf32>, vector<64x32xf32> -> vector<64x32xf32>
    %66 = vector.shape_cast %53 : vector<64x1xf32> to vector<1x64x1xf32>
    %cst_53 = arith.constant dense<0.000000e+00> : vector<1xf32>
    %67 = vector.multi_reduction <add>, %66, %cst_53 [1, 2] : vector<1x64x1xf32> to vector<1xf32>
    %68 = vector.shape_cast %67 : vector<1xf32> to vector<1x1x1xf32>
    %69 = vector.extract %68[0, 0, 0] : f32 from vector<1x1x1xf32>
    %cst_54 = arith.constant 2.000000e+00 : f32
    %70 = arith.mulf %cst_54, %69 : f32
    %cst_55 = arith.constant 1.280000e+02 : f32
    %71 = arith.subf %cst_55, %70 : f32
    %72 = tpu.concatenate %41, %65 in 1 : vector<64x32xf32>, vector<64x32xf32> -> vector<64x64xf32>
    %c264 = arith.constant 264 : index
    %c0_56 = arith.constant 0 : index
    %73 = vector.load %arg3[%c264, %c0_56] : memref<624x64xf32, #tpu.memory_space<vmem>>, vector<4x64xf32>
    %cst_57 = arith.constant dense<0.000000e+00> : vector<4x64xf32>
    %74 = tpu.matmul %73, %72, %cst_57 {dimension_numbers = #tpu.dot_dimension_numbers<[1], [0], [0], [1], [0, 0, 1, 1], [], []>} : vector<4x64xf32>, vector<64x64xf32>, vector<4x64xf32> -> vector<4x64xf32>
    %75 = vector.extract_strided_slice %74 {offsets = [0, 0], sizes = [2, 64], strides = [1, 1]} : vector<4x64xf32> to vector<2x64xf32>
    %76 = vector.extract_strided_slice %74 {offsets = [2, 0], sizes = [2, 64], strides = [1, 1]} : vector<4x64xf32> to vector<2x64xf32>
    %c272 = arith.constant 272 : index
    %c0_58 = arith.constant 0 : index
    %77 = vector.load %arg3[%c272, %c0_58] : memref<624x64xf32, #tpu.memory_space<vmem>>, vector<64x64xf32>
    %cst_59 = arith.constant dense<0.000000e+00> : vector<2x64xf32>
    %78 = tpu.matmul %75, %77, %cst_59 {dimension_numbers = #tpu.dot_dimension_numbers<[1], [0], [0], [1], [0, 0, 1, 1], [], []>} : vector<2x64xf32>, vector<64x64xf32>, vector<2x64xf32> -> vector<2x64xf32>
    %c336 = arith.constant 336 : index
    %c0_60 = arith.constant 0 : index
    %79 = vector.load %arg3[%c336, %c0_60] : memref<624x64xf32, #tpu.memory_space<vmem>>, vector<64x64xf32>
    %cst_61 = arith.constant dense<0.000000e+00> : vector<2x64xf32>
    %80 = tpu.matmul %76, %79, %cst_61 {dimension_numbers = #tpu.dot_dimension_numbers<[1], [0], [0], [1], [0, 0, 1, 1], [], []>} : vector<2x64xf32>, vector<64x64xf32>, vector<2x64xf32> -> vector<2x64xf32>
    %81 = arith.addf %78, %80 : vector<2x64xf32>
    %c400 = arith.constant 400 : index
    %c0_62 = arith.constant 0 : index
    %82 = vector.load %arg3[%c400, %c0_62] : memref<624x64xf32, #tpu.memory_space<vmem>>, vector<1x64xf32>
    %83 = vector.broadcast %82 : vector<1x64xf32> to vector<2x64xf32>
    %84 = arith.addf %81, %83 : vector<2x64xf32>
    %cst_63 = arith.constant 0.000000e+00 : f32
    %85 = vector.broadcast %cst_63 : f32 to vector<2x64xf32>
    %86 = arith.maximumf %84, %85 : vector<2x64xf32>
    %c408 = arith.constant 408 : index
    %c0_64 = arith.constant 0 : index
    %87 = vector.load %arg3[%c408, %c0_64] : memref<624x64xf32, #tpu.memory_space<vmem>>, vector<64x64xf32>
    %cst_65 = arith.constant dense<0.000000e+00> : vector<2x64xf32>
    %88 = tpu.matmul %86, %87, %cst_65 {dimension_numbers = #tpu.dot_dimension_numbers<[1], [0], [0], [1], [0, 0, 1, 1], [], []>} : vector<2x64xf32>, vector<64x64xf32>, vector<2x64xf32> -> vector<2x64xf32>
    %c472 = arith.constant 472 : index
    %c0_66 = arith.constant 0 : index
    %89 = vector.load %arg3[%c472, %c0_66] : memref<624x64xf32, #tpu.memory_space<vmem>>, vector<1x64xf32>
    %90 = vector.broadcast %89 : vector<1x64xf32> to vector<2x64xf32>
    %91 = arith.addf %88, %90 : vector<2x64xf32>
    %cst_67 = arith.constant 0.000000e+00 : f32
    %92 = vector.broadcast %cst_67 : f32 to vector<2x64xf32>
    %93 = arith.maximumf %91, %92 : vector<2x64xf32>
    %c480 = arith.constant 480 : index
    %c0_68 = arith.constant 0 : index
    %94 = vector.load %arg3[%c480, %c0_68] : memref<624x64xf32, #tpu.memory_space<vmem>>, vector<64x64xf32>
    %cst_69 = arith.constant dense<0.000000e+00> : vector<2x64xf32>
    %95 = tpu.matmul %93, %94, %cst_69 {dimension_numbers = #tpu.dot_dimension_numbers<[1], [0], [0], [1], [0, 0, 1, 1], [], []>} : vector<2x64xf32>, vector<64x64xf32>, vector<2x64xf32> -> vector<2x64xf32>
    %c544 = arith.constant 544 : index
    %c0_70 = arith.constant 0 : index
    %96 = vector.load %arg3[%c544, %c0_70] : memref<624x64xf32, #tpu.memory_space<vmem>>, vector<1x64xf32>
    %97 = vector.broadcast %96 : vector<1x64xf32> to vector<2x64xf32>
    %98 = arith.addf %95, %97 : vector<2x64xf32>
    %cst_71 = arith.constant 0.000000e+00 : f32
    %99 = vector.broadcast %cst_71 : f32 to vector<2x64xf32>
    %100 = arith.maximumf %98, %99 : vector<2x64xf32>
    %c552 = arith.constant 552 : index
    %c0_72 = arith.constant 0 : index
    %101 = vector.load %arg3[%c552, %c0_72] : memref<624x64xf32, #tpu.memory_space<vmem>>, vector<64x1xf32>
    %cst_73 = arith.constant dense<0.000000e+00> : vector<2x1xf32>
    %102 = tpu.matmul %100, %101, %cst_73 {dimension_numbers = #tpu.dot_dimension_numbers<[1], [0], [0], [1], [0, 0, 1, 1], [], []>} : vector<2x64xf32>, vector<64x1xf32>, vector<2x1xf32> -> vector<2x1xf32>
    %c616 = arith.constant 616 : index
    %c0_74 = arith.constant 0 : index
    %103 = vector.load %arg3[%c616, %c0_74] : memref<624x64xf32, #tpu.memory_space<vmem>>, vector<1x1xf32>
    %104 = vector.broadcast %103 : vector<1x1xf32> to vector<2x1xf32>
    %105 = arith.addf %102, %104 : vector<2x1xf32>
    %c0_75 = arith.constant 0 : index
    %c0_76 = arith.constant 0 : index
    %c0_77 = arith.constant 0 : index
    %106 = vector.load %arg4[%c0_75, %c0_76, %c0_77] : memref<1x2x1xf32, #tpu.memory_space<vmem>>, vector<1x2x1xf32>
    %107 = vector.shape_cast %106 : vector<1x2x1xf32> to vector<2x1xf32>
    %108 = arith.subf %105, %107 : vector<2x1xf32>
    %109 = arith.mulf %108, %108 : vector<2x1xf32>
    %110 = vector.shape_cast %109 : vector<2x1xf32> to vector<1x2x1xf32>
    %cst_78 = arith.constant dense<0.000000e+00> : vector<1xf32>
    %111 = vector.multi_reduction <add>, %110, %cst_78 [1, 2] : vector<1x2x1xf32> to vector<1xf32>
    %112 = vector.shape_cast %111 : vector<1xf32> to vector<1x1x1xf32>
    %113 = vector.extract %112[0, 0, 0] : f32 from vector<1x1x1xf32>
    %cst_79 = arith.constant 2.000000e+00 : f32
    %114 = arith.divf %113, %cst_79 : f32
    %cst_80 = arith.constant 1.250000e+00 : f32
    %115 = arith.mulf %cst_80, %71 : f32
    %cst_81 = arith.constant 1.024000e+03 : f32
    %116 = arith.divf %115, %cst_81 : f32
    %117 = arith.addf %114, %116 : f32
    %118 = tpu.iota {dimensions = array<i32: 1>} : vector<2x128xi32>
    %c0_i32 = arith.constant 0 : i32
    %119 = vector.broadcast %c0_i32 : i32 to vector<2x128xi32>
    %120 = arith.cmpi eq, %118, %119 : vector<2x128xi32>
    %c1_i32 = arith.constant 1 : i32
    %121 = vector.broadcast %c1_i32 : i32 to vector<2x128xi32>
    %122 = arith.cmpi eq, %118, %121 : vector<2x128xi32>
    %cst_82 = arith.constant 0.000000e+00 : f32
    %123 = vector.broadcast %117 : f32 to vector<2x128xf32>
    %124 = vector.broadcast %cst_82 : f32 to vector<2x128xf32>
    %125 = arith.select %122, %123, %124 : vector<2x128xi1>, vector<2x128xf32>
    %126 = vector.shape_cast %105 : vector<2x1xf32> to vector<2x1xf32>
    %127 = vector.broadcast %126 : vector<2x1xf32> to vector<2x128xf32>
    %128 = arith.select %120, %127, %125 : vector<2x128xi1>, vector<2x128xf32>
    %c0_83 = arith.constant 0 : index
    %c0_84 = arith.constant 0 : index
    %c0_85 = arith.constant 0 : index
    %129 = vector.load %arg5[%c0_83, %c0_84, %c0_85] : memref<1x2x128xf32, #tpu.memory_space<vmem>>, vector<1x2x128xf32>
    %130 = vector.shape_cast %129 : vector<1x2x128xf32> to vector<2x128xf32>
    %131 = vector.shape_cast %128 : vector<2x128xf32> to vector<1x2x128xf32>
    tpu.vector_store %arg5[%c0_83, %c0_84, %c0_85], %131 {strides = array<i32>} : memref<1x2x128xf32, #tpu.memory_space<vmem>>, vector<1x2x128xf32>,
    return
  }
  func.func @transform_0(%arg0: i32) -> (i32, i32, i32) {
    %c0_i32 = arith.constant 0 : i32
    %c0_i32_0 = arith.constant 0 : i32
    %c0_i32_1 = arith.constant 0 : i32
    return %arg0, %c0_i32, %c0_i32_0 : i32, i32, i32
  }
  func.func @transform_1(%arg0: i32) -> (i32, i32, i32) {
    %c0_i32 = arith.constant 0 : i32
    %c0_i32_0 = arith.constant 0 : i32
    %c0_i32_1 = arith.constant 0 : i32
    return %arg0, %c0_i32, %c0_i32_0 : i32, i32, i32
  }
  func.func @transform_2(%arg0: i32) -> (i32, i32) {
    %c0_i32 = arith.constant 0 : i32
    %c0_i32_0 = arith.constant 0 : i32
    %c0_i32_1 = arith.constant 0 : i32
    return %c0_i32, %c0_i32_0 : i32, i32
  }
  func.func @transform_3(%arg0: i32) -> (i32, i32, i32) {
    %c0_i32 = arith.constant 0 : i32
    %c0_i32_0 = arith.constant 0 : i32
    %c0_i32_1 = arith.constant 0 : i32
    return %arg0, %c0_i32, %c0_i32_0 : i32, i32, i32
  }
  func.func @transform_4(%arg0: i32) -> (i32, i32, i32) {
    %c0_i32 = arith.constant 0 : i32
    %c0_i32_0 = arith.constant 0 : i32
    %c0_i32_1 = arith.constant 0 : i32
    return %arg0, %c0_i32, %c0_i32_0 : i32, i32, i32
  }
}

</mosaic_0001>

<bundles_post_ra>
// kernel: ddg_forward_batched.1
= control target key start
LH: loop header
LB: loop body
LE: loop exit
PB: predicated region body
PF: predicated region fallthrough
CT: control target
= control target key end

     0   :  { %s3521_s15 = smov 0   ;;  %s4286_s0 = inlined_call_operand.vmem [shape: f32[2,64,192], index: 0, kind: input, shape index: {}]   ;;  %s4287_s1 = inlined_call_operand.vmem [shape: f32[2,64,8], index: 1, kind: input, shape index: {}]   ;;  %s4288_s2 = inlined_call_operand.vmem [shape: f32[624,64], index: 2, kind: input, shape index: {}]   ;;  %s4289_s3 = inlined_call_operand.vmem [shape: f32[2,2,1], index: 3, kind: input, shape index: {}]   ;;  %s4290_s4 = inlined_call_operand.vmem [shape: f32[2,2,128], index: 4, kind: output, shape index: {}]  }
   0x1 LB: > { %s2827_s16 = sadd.s32 4294967295, %s3490_s15   ;;  %p2831_p0 = scmp.ge.s32.totalorder %s3490_s15, 1  ;;  %s3490_s15 = sphi %s3521_s15, %s14_s15  }
   0x2   : > { %p181_p1 = scmp.lt.s32.totalorder %s3490_s15, 3 }
   0x4   : > { %p182_p2 = pnand %p2831_p0, %p181_p1 }
   0x5   : > { %p215_p3 = scmp.lt.s32.totalorder (!%p182_p2), %s2827_s16, 1  ;;  %s3493_s19 = smov (!%p182_p2), 32  }
   0x6   : > { %185 = sbr.rel (%p182_p2) target bundleno = 3687 (0xe67), region = 36 }
   0xb   : > { %v381_v0 = vld [vmem:[%s4288_s2 + $0x8] sm:$0xff]  ;;  %v241_v1 = vld [vmem:[%s4288_s2] sm:$0xff]  ;;  %v495_v2 = vld [vmem:[%s4288_s2 + $0x10] sm:$0xff]  ;;  %s4292_s16 = smov (!%p215_p3, %s2827_s16), 1  ;;  %vm242_vm0 = vcmask 64512   ;;  %v3492_v11 = vmov 0.0  }
   0xc   : > { %3153 = vmatprep.subr.mxu1 %v381_v0  ;;  %3139 = vmatprep.subr.mxu0 %v241_v1  ;;  %s2965_s23 = sshll.u32 %s4292_s16, 6  ;;  %s2964_s27 = sshll.u32 %s4292_s16, 7  ;;  %vm649_vm1 = vcmask 523264   ;;  %v782_v13 = vld [vmem:[%s4288_s2 + $0x30] sm:$0xff]  ;;  %v781_v14 = vld [vmem:[%s4288_s2 + $0x28] sm:$0xff]  ;;  %vm372_vm2 = vcmask 261120  }
   0xd   : > { %3154 = vmatpush3.msra.mxu1 %v381_v0  ;;  %3140 = vmatpush3.msra.mxu0 %v241_v1  ;;  %s224_s26 = scalar_lea.vmem %s4287_s1, %s2965_s23  ;;  %s3573_s30 = scalar_lea.vmem %s4286_s0, %s2964_s27  ;;  %vm2147_vm3 = vcmask 7168  }
   0xe   : > { %3167 = vmatprep.subr.mxu0 %v495_v2  ;;  %v233_v3 = vld [vmem:[%s224_s26] sm:$0xff]  ;;  %v234_v4 = vld [vmem:[%s224_s26 + $0x8] sm:$0xff]  ;;  %v235_v5 = vld [vmem:[%s224_s26 + $0x10] sm:$0xff]  ;;  %674 = vmatprep.subr.mxu1 %v3492_v11  ;;  %s2836_s10 = sshll.u32 %s4292_s16, 1 }
   0xf   : > { %3155 = vmatprep.mubr.msk.f32.mxu1 %vm242_vm0, %v233_v3  ;;  %3141 = vmatprep.mubr.msk.f32.mxu0 %vm242_vm0, %v233_v3  ;;  %v236_v6 = vld [vmem:[%s224_s26 + $0x18] sm:$0xff]  ;;  %v237_v7 = vld [vmem:[%s224_s26 + $0x20] sm:$0xff]  ;;  %v238_v8 = vld [vmem:[%s224_s26 + $0x28] sm:$0xff]  ;;  %s228_s13 = scalar_lea.vmem %s4289_s3, %s2836_s10  ;;  %s232_s28 = scalar_lea.vmem %s4290_s4, %s2836_s10 }
  0x10   : > { %3156 = vmatmul.mubr.msk.f32.vlgmr.msra.gmra.mxu1 %vm242_vm0, %v234_v4  ;;  %3142 = vmatmul.mubr.msk.f32.vlgmr.msra.gmra.mxu0 %vm242_vm0, %v234_v4  ;;  %v239_v9 = vld [vmem:[%s224_s26 + $0x30] sm:$0xff]  ;;  %v240_v10 = vld [vmem:[%s224_s26 + $0x38] sm:$0xff]  ;;  %v3576_v12 = vld [vmem:[%s3573_s30 + $0x8] sm:$0xff] }
  0x11   : > { %3158 = vmatprep.mubr.msk.f32.mxu1 %vm242_vm0, %v235_v5  ;;  %3144 = vmatprep.mubr.msk.f32.mxu0 %vm242_vm0, %v235_v5  ;;  %v3633_v62 = vld [vmem:[%s3573_s30] sm:$0xff]  ;;  %v3637_v0 = vld [vmem:[%s3573_s30 + $0x18] sm:$0xff]  ;;  %v3644_v1 = vld [vmem:[%s3573_s30 + $0x10] sm:$0xff] }
  0x12   : > { %3168 = vmatpush3.msra.mxu0 %v495_v2  ;;  %v3647_v2 = vld [vmem:[%s3573_s30 + $0x28] sm:$0xff] }
  0x13   : > { %3181 = vmatprep.subr.mxu0 %v782_v13 }
  0x14   : > { %3159 = vmatmul.mubr.msk.f32.gmra.mxu1 %vm242_vm0, %v236_v6  ;;  %3145 = vmatmul.mubr.msk.f32.gmra.mxu0 %vm242_vm0, %v236_v6 }
  0x15   : > { %3161 = vmatprep.mubr.msk.f32.mxu1 %vm242_vm0, %v237_v7  ;;  %3147 = vmatprep.mubr.msk.f32.mxu0 %vm242_vm0, %v237_v7 }
  0x18   : > { %3162 = vmatmul.mubr.msk.f32.gmra.mxu1 %vm242_vm0, %v238_v8  ;;  %3148 = vmatmul.mubr.msk.f32.gmra.mxu0 %vm242_vm0, %v238_v8 }
  0x19   : > { %3164 = vmatprep.mubr.msk.f32.mxu1 %vm242_vm0, %v239_v9  ;;  %3150 = vmatprep.mubr.msk.f32.mxu0 %vm242_vm0, %v239_v9 }
  0x1c   : > { %3165 = vmatmul.mubr.msk.f32.gmra.mxu1 %vm242_vm0, %v240_v10  ;;  %3151 = vmatmul.mubr.msk.f32.gmra.mxu0 %vm242_vm0, %v240_v10 }
  0x1d   : > { %3169 = vmatprep.mubr.msk.f32.mxu0 %vm242_vm0, %v233_v3  ;;  %2862 = vmatprep.mubr.msk.f32.mxu1 %vm649_vm1, %v3576_v12  ;;  %v3653_v3 = vld [vmem:[%s3573_s30 + $0x20] sm:$0xff] }
  0x20   : > { %3170 = vmatmul.mubr.msk.f32.vlgmr.msra.gmra.mxu0 %vm242_vm0, %v234_v4  ;;  %v3656_v4 = vld [vmem:[%s3573_s30 + $0x38] sm:$0xff] }
  0x21   : > { %3172 = vmatprep.mubr.msk.f32.mxu0 %vm242_vm0, %v235_v5  ;;  %3182 = vmatpush3.msra.mxu0 %v782_v13  ;;  %v3662_v5 = vld [vmem:[%s3573_s30 + $0x30] sm:$0xff]  ;;  %v3689_v13 = vld [vmem:[%s3573_s30 + $0x60] sm:$0xff] }
  0x22   : > { %3183 = vmatprep.subr.mxu0 %v781_v14 }
  0x23   : > { %3184 = vmatpush3.msra.mxu0 %v781_v14  ;;  %v3692_v14 = vld [vmem:[%s3573_s30 + $0x78] sm:$0xff] }
  0x24   : > { %3173 = vmatmul.mubr.msk.f32.gmra.mxu0 %vm242_vm0, %v236_v6  ;;  %v3665_v6 = vld [vmem:[%s3573_s30 + $0x48] sm:$0xff] }
  0x25   : > { %3175 = vmatprep.mubr.msk.f32.mxu0 %vm242_vm0, %v237_v7  ;;  %v3671_v7 = vld [vmem:[%s3573_s30 + $0x40] sm:$0xff] }
  0x28   : > { %3176 = vmatmul.mubr.msk.f32.gmra.mxu0 %vm242_vm0, %v238_v8  ;;  %v3674_v8 = vld [vmem:[%s3573_s30 + $0x58] sm:$0xff] }
  0x29   : > { %3178 = vmatprep.mubr.msk.f32.mxu0 %vm242_vm0, %v239_v9  ;;  %v3680_v9 = vld [vmem:[%s3573_s30 + $0x50] sm:$0xff] }
  0x2c   : > { %3179 = vmatmul.mubr.msk.f32.gmra.mxu0 %vm242_vm0, %v240_v10  ;;  %v3683_v10 = vld [vmem:[%s3573_s30 + $0x68] sm:$0xff] }
  0xd0   : > { %v3157_v15 = vpop.f32.mrf.mxu1  ;;  %v3143_v16 = vpop.f32.mrf.mxu0 }
  0xd1   : > { %488 = vst.msk [vmem:[#allocation2 + $0x48] sm:$0xff] %vm372_vm2, %v3157_v15  ;;  %374 = vst.msk [vmem:[#allocation2 + $0x8] sm:$0xff] %vm372_vm2, %v3143_v16  ;;  %v3698_v15 = vld [vmem:[%s3573_s30 + $0x70] sm:$0xff]  ;;  %v780_v16 = vld [vmem:[%s4288_s2 + $0x20] sm:$0xff] }
  0xd2   : > { %v448_v17 = vpop.f32.mrf.mxu1  ;;  %v333_v18 = vpop.f32.mrf.mxu0  ;;  %3185 = vmatprep.subr.mxu0 %v780_v16 }
  0xd3   : > { %487 = vst.msk [vmem:[#allocation2 + $0x40] sm:$0xff] %vm372_vm2, %v448_v17  ;;  %373 = vst.msk [vmem:[#allocation2] sm:$0xff] %vm372_vm2, %v333_v18  ;;  %3186 = vmatpush3.msra.mxu0 %v780_v16  ;;  %v779_v17 = vld [vmem:[%s4288_s2 + $0x18] sm:$0xff] }
  0xd4   : > { %v3160_v19 = vpop.f32.mrf.mxu1  ;;  %v3146_v20 = vpop.f32.mrf.mxu0  ;;  %3187 = vmatprep.subr.mxu0 %v779_v17 }
  0xd5   : > { %490 = vst.msk [vmem:[#allocation2 + $0x58] sm:$0xff] %vm372_vm2, %v3160_v19  ;;  %376 = vst.msk [vmem:[#allocation2 + $0x18] sm:$0xff] %vm372_vm2, %v3146_v20  ;;  %3188 = vmatpush3.msra.mxu0 %v779_v17 }
  0xd6   : > { %v458_v21 = vpop.f32.mrf.mxu1  ;;  %v343_v22 = vpop.f32.mrf.mxu0 }
  0xd7   : > { %489 = vst.msk [vmem:[#allocation2 + $0x50] sm:$0xff] %vm372_vm2, %v458_v21  ;;  %375 = vst.msk [vmem:[#allocation2 + $0x10] sm:$0xff] %vm372_vm2, %v343_v22 }
  0xd8   : > { %v3163_v23 = vpop.f32.mrf.mxu1  ;;  %v3149_v24 = vpop.f32.mrf.mxu0  ;;  %v634_v45 = vld [vmem:[#allocation2 + $0x48] sm:$0xff] }
  0xd9   : > { %492 = vst.msk [vmem:[#allocation2 + $0x68] sm:$0xff] %vm372_vm2, %v3163_v23  ;;  %378 = vst.msk [vmem:[#allocation2 + $0x28] sm:$0xff] %vm372_vm2, %v3149_v24  ;;  %v626_v53 = vld [vmem:[#allocation2 + $0x8] sm:$0xff] }
  0xda   : > { %v468_v25 = vpop.f32.mrf.mxu1  ;;  %v353_v26 = vpop.f32.mrf.mxu0  ;;  %v633_v46 = vld [vmem:[#allocation2 + $0x40] sm:$0xff] }
  0xdb   : > { %491 = vst.msk [vmem:[#allocation2 + $0x60] sm:$0xff] %vm372_vm2, %v468_v25  ;;  %377 = vst.msk [vmem:[#allocation2 + $0x20] sm:$0xff] %vm372_vm2, %v353_v26  ;;  %v625_v54 = vld [vmem:[#allocation2] sm:$0xff] }
  0xdc   : > { %v3166_v27 = vpop.f32.mrf.mxu1  ;;  %v3152_v28 = vpop.f32.mrf.mxu0  ;;  %v636_v41 = vld [vmem:[#allocation2 + $0x58] sm:$0xff] }
  0xdd   : > { %494 = vst.msk [vmem:[#allocation2 + $0x78] sm:$0xff] %vm372_vm2, %v3166_v27  ;;  %380 = vst.msk [vmem:[#allocation2 + $0x38] sm:$0xff] %vm372_vm2, %v3152_v28  ;;  %v628_v51 = vld [vmem:[#allocation2 + $0x18] sm:$0xff] }
  0xde   : > { %v478_v29 = vpop.f32.mrf.mxu1  ;;  %v363_v30 = vpop.f32.mrf.mxu0  ;;  %v635_v43 = vld [vmem:[#allocation2 + $0x50] sm:$0xff] }
  0xdf   : > { %493 = vst.msk [vmem:[#allocation2 + $0x70] sm:$0xff] %vm372_vm2, %v478_v29  ;;  %379 = vst.msk [vmem:[#allocation2 + $0x30] sm:$0xff] %vm372_vm2, %v363_v30  ;;  %v627_v52 = vld [vmem:[#allocation2 + $0x10] sm:$0xff] }
  0xe0   : > { %v3171_v31 = vpop.f32.mrf.mxu0  ;;  %v638_v37 = vld [vmem:[#allocation2 + $0x68] sm:$0xff] }
  0xe1   : > { %602 = vst.msk [vmem:[#allocation2 + $0x88] sm:$0xff] %vm372_vm2, %v3171_v31  ;;  %v630_v49 = vld [vmem:[#allocation2 + $0x28] sm:$0xff] }
  0xe2   : > { %v562_v32 = vpop.f32.mrf.mxu0  ;;  %v637_v39 = vld [vmem:[#allocation2 + $0x60] sm:$0xff] }
  0xe3   : > { %601 = vst.msk [vmem:[#allocation2 + $0x80] sm:$0xff] %vm372_vm2, %v562_v32  ;;  %v629_v50 = vld [vmem:[#allocation2 + $0x20] sm:$0xff] }
  0xe4   : > { %v640_v33 = vld [vmem:[#allocation2 + $0x78] sm:$0xff]  ;;  %v3174_v34 = vpop.f32.mrf.mxu0 }
  0xe5   : > { %675 = vmatpush1.msra.mxu1 %v640_v33  ;;  %604 = vst.msk [vmem:[#allocation2 + $0x98] sm:$0xff] %vm372_vm2, %v3174_v34  ;;  %v632_v47 = vld [vmem:[#allocation2 + $0x38] sm:$0xff]  ;;  %v927_v34 = vld [vmem:[%s4288_s2 + $0x50] sm:$0xff] }
  0xe6   : > { %676 = vmatprep.subr.mxu1 %v3492_v11  ;;  %v639_v35 = vld [vmem:[#allocation2 + $0x70] sm:$0xff]  ;;  %v572_v36 = vpop.f32.mrf.mxu0  ;;  %v928_v33 = vld [vmem:[%s4288_s2 + $0x58] sm:$0xff] }
  0xe7   : > { %677 = vmatpush1.msra.mxu1 %v639_v35  ;;  %603 = vst.msk [vmem:[#allocation2 + $0x90] sm:$0xff] %vm372_vm2, %v572_v36  ;;  %v631_v48 = vld [vmem:[#allocation2 + $0x30] sm:$0xff]  ;;  %3201 = vmatprep.subr.mxu0 %v928_v33  ;;  %v926_v35 = vld [vmem:[%s4288_s2 + $0x48] sm:$0xff]  ;;  %v925_v36 = vld [vmem:[%s4288_s2 + $0x40] sm:$0xff] }
  0xe8   : > { %678 = vmatprep.subr.mxu1 %v3492_v11  ;;  %v3177_v38 = vpop.f32.mrf.mxu0  ;;  %v642_v61 = vld [vmem:[#allocation2 + $0x88] sm:$0xff] }
  0xe9   : > { %679 = vmatpush1.msra.mxu1 %v638_v37  ;;  %606 = vst.msk [vmem:[#allocation2 + $0xa8] sm:$0xff] %vm372_vm2, %v3177_v38  ;;  %v1069_v37 = vld [vmem:[%s4288_s2 + $0x78] sm:$0xff] }
  0xea   : > { %680 = vmatprep.subr.mxu1 %v3492_v11  ;;  %v582_v40 = vpop.f32.mrf.mxu0  ;;  %v641_v63 = vld [vmem:[#allocation2 + $0x80] sm:$0xff]  ;;  %v2870_v38 = vld [vmem:[%s4288_s2 + $0x38] ss:$0 sm:$0xff] }
  0xeb   : > { %681 = vmatpush1.msra.mxu1 %v637_v39  ;;  %605 = vst.msk [vmem:[#allocation2 + $0xa0] sm:$0xff] %vm372_vm2, %v582_v40 }
  0xec   : > { %682 = vmatprep.subr.mxu1 %v3492_v11  ;;  %v3180_v42 = vpop.f32.mrf.mxu0  ;;  %v644_v59 = vld [vmem:[#allocation2 + $0x98] sm:$0xff] }
  0xed   : > { %683 = vmatpush1.msra.mxu1 %v636_v41  ;;  %608 = vst.msk [vmem:[#allocation2 + $0xb8] sm:$0xff] %vm372_vm2, %v3180_v42 }
  0xee   : > { %684 = vmatprep.subr.mxu1 %v3492_v11  ;;  %v592_v44 = vpop.f32.mrf.mxu0  ;;  %v643_v60 = vld [vmem:[#allocation2 + $0x90] sm:$0xff] }
  0xef   : > { %685 = vmatpush1.msra.mxu1 %v635_v43  ;;  %607 = vst.msk [vmem:[#allocation2 + $0xb0] sm:$0xff] %vm372_vm2, %v592_v44 }
  0xf0   : > { %686 = vmatprep.subr.mxu1 %v3492_v11  ;;  %v646_v57 = vld [vmem:[#allocation2 + $0xa8] sm:$0xff] }
  0xf1   : > { %687 = vmatpush1.msra.mxu1 %v634_v45  ;;  %v1068_v45 = vld [vmem:[%s4288_s2 + $0x70] sm:$0xff] }
  0xf2   : > { %688 = vmatprep.subr.mxu1 %v3492_v11  ;;  %v645_v58 = vld [vmem:[#allocation2 + $0xa0] sm:$0xff] }
  0xf3   : > { %689 = vmatpush1.msra.mxu1 %v633_v46 }
  0xf4   : > { %690 = vmatprep.subr.mxu1 %v3492_v11  ;;  %v648_v55 = vld [vmem:[#allocation2 + $0xb8] sm:$0xff] }
  0xf5   : > { %691 = vmatpush1.msra.mxu1 %v632_v47  ;;  %v1067_v47 = vld [vmem:[%s4288_s2 + $0x68] sm:$0xff] }
  0xf6   : > { %692 = vmatprep.subr.mxu1 %v3492_v11  ;;  %v647_v56 = vld [vmem:[#allocation2 + $0xb0] sm:$0xff] }
  0xf7   : > { %693 = vmatpush1.msra.mxu1 %v631_v48 }
  0xf8   : > { %694 = vmatprep.subr.mxu1 %v3492_v11 }
  0xf9   : > { %695 = vmatpush1.msra.mxu1 %v630_v49 }
  0xfa   : > { %696 = vmatprep.subr.mxu1 %v3492_v11 }
  0xfb   : > { %697 = vmatpush1.msra.mxu1 %v629_v50 }
  0xfc   : > { %698 = vmatprep.subr.mxu1 %v3492_v11 }
  0xfd   : > { %699 = vmatpush1.msra.mxu1 %v628_v51  ;;  %v1066_v51 = vld [vmem:[%s4288_s2 + $0x60] sm:$0xff] }
  0xfe   : > { %700 = vmatprep.subr.mxu1 %v3492_v11 }
  0xff   : > { %701 = vmatpush1.msra.mxu1 %v627_v52 }
 0x100   : > { %702 = vmatprep.subr.mxu1 %v3492_v11 }
 0x101   : > { %703 = vmatpush1.msra.mxu1 %v626_v53  ;;  %v1186_v53 = vld [vmem:[%s4288_s2 + $0x98] sm:$0xff] }
 0x102   : > { %704 = vmatprep.subr.mxu1 %v3492_v11 }
 0x103   : > { %705 = vmatpush1.msra.mxu1 %v625_v54 }
 0x104   : > { %722 = vmatprep.subr.mxu1 %v3492_v11 }
 0x105   : > { %723 = vmatpush2.msra.mxu1 %v648_v55 }
 0x106   : > { %724 = vmatprep.subr.mxu1 %v3492_v11 }
 0x107   : > { %725 = vmatpush2.msra.mxu1 %v647_v56 }
 0x108   : > { %726 = vmatprep.subr.mxu1 %v3492_v11 }
 0x109   : > { %727 = vmatpush2.msra.mxu1 %v646_v57 }
 0x10a   : > { %728 = vmatprep.subr.mxu1 %v3492_v11 }
 0x10b   : > { %729 = vmatpush2.msra.mxu1 %v645_v58 }
 0x10c   : > { %730 = vmatprep.subr.mxu1 %v3492_v11 }
 0x10d   : > { %731 = vmatpush2.msra.mxu1 %v644_v59 }
 0x10e   : > { %732 = vmatprep.subr.mxu1 %v3492_v11 }
 0x10f   : > { %733 = vmatpush2.msra.mxu1 %v643_v60 }
 0x110   : > { %734 = vmatprep.subr.mxu1 %v3492_v11 }
 0x111   : > { %735 = vmatpush2.msra.mxu1 %v642_v61 }
 0x112   : > { %736 = vmatprep.subr.mxu1 %v3492_v11 }
 0x113   : > { %737 = vmatpush2.msra.mxu1 %v641_v63 }
 0x114   : > { %739 = vmatmul.mubr.f32.vlgmr.msra.gmra.mxu1 %v3633_v62  ;;  %1364 = vmatprep.subr.mxu1 %v3492_v11 }
 0x115   : > { %2863 = vmatprep.mubr.msk.f32.mxu1 %vm649_vm1, %v3637_v0 }
 0x118   : > { %744 = vmatmul.mubr.f32.gmra.mxu1 %v3644_v1 }
 0x119   : > { %2864 = vmatprep.mubr.msk.f32.mxu1 %vm649_vm1, %v3647_v2 }
 0x11c   : > { %749 = vmatmul.mubr.f32.gmra.mxu1 %v3653_v3 }
 0x11d   : > { %2865 = vmatprep.mubr.msk.f32.mxu1 %vm649_vm1, %v3656_v4 }
 0x120   : > { %754 = vmatmul.mubr.f32.gmra.mxu1 %v3662_v5 }
 0x121   : > { %2866 = vmatprep.mubr.msk.f32.mxu1 %vm649_vm1, %v3665_v6 }
 0x124   : > { %759 = vmatmul.mubr.f32.gmra.mxu1 %v3671_v7 }
 0x125   : > { %2867 = vmatprep.mubr.msk.f32.mxu1 %vm649_vm1, %v3674_v8 }
 0x128   : > { %764 = vmatmul.mubr.f32.gmra.mxu1 %v3680_v9 }
 0x129   : > { %2868 = vmatprep.mubr.msk.f32.mxu1 %vm649_vm1, %v3683_v10 }
 0x12c   : > { %769 = vmatmul.mubr.f32.gmra.mxu1 %v3689_v13 }
 0x12d   : > { %2869 = vmatprep.mubr.msk.f32.mxu1 %vm649_vm1, %v3692_v14 }
 0x130   : > { %774 = vmatmul.mubr.f32.gmra.mxu1 %v3698_v15 }
 0x131   : > { %2903 = vmatprep.mubr.msk.f32.mxu1 %vm649_vm1, %v3576_v12 }
 0x1d4   : > { %v740_v18 = vpop.f32.mrf.mxu1 }
 0x1d5   : > { %3189 = vmatprep.mubr.msk.f32.mxu0 %vm372_vm2, %v740_v18 }
 0x1d6   : > { %v742_v19 = vpop.f32.mrf.mxu1 }
 0x1d8   : > { %v745_v20 = vpop.f32.mrf.mxu1 }
 0x1d9   : > { %3190 = vmatmul.mubr.msk.f32.vlgmr.msra.gmra.mxu0 %vm372_vm2, %v745_v20  ;;  %v1185_v20 = vld [vmem:[%s4288_s2 + $0x90] sm:$0xff] }
 0x1da   : > { %v747_v12 = vpop.f32.mrf.mxu1  ;;  %3202 = vmatpush3.msra.mxu0 %v928_v33 }
 0x1db   : > { %3203 = vmatprep.subr.mxu0 %v927_v34  ;;  %v1184_v12 = vld [vmem:[%s4288_s2 + $0x88] sm:$0xff] }
 0x1dc   : > { %v750_v21 = vpop.f32.mrf.mxu1  ;;  %3204 = vmatpush3.msra.mxu0 %v927_v34 }
 0x1dd   : > { %3192 = vmatprep.mubr.msk.f32.mxu0 %vm372_vm2, %v750_v21  ;;  %3205 = vmatprep.subr.mxu0 %v926_v35  ;;  %v1183_v21 = vld [vmem:[%s4288_s2 + $0x80] sm:$0xff] }
 0x1de   : > { %v752_v22 = vpop.f32.mrf.mxu1  ;;  %3206 = vmatpush3.msra.mxu0 %v926_v35 }
 0x1df   : > { %3207 = vmatprep.subr.mxu0 %v925_v36  ;;  %v1472_v22 = vld [vmem:[%s4288_s2 + $0xb8] sm:$0xff] }
 0x1e0   : > { %v755_v23 = vpop.f32.mrf.mxu1  ;;  %3208 = vmatpush3.msra.mxu0 %v925_v36 }
 0x1e1   : > { %3193 = vmatmul.mubr.msk.f32.gmra.mxu0 %vm372_vm2, %v755_v23  ;;  %3221 = vmatprep.subr.mxu0 %v1069_v37  ;;  %v1471_v23 = vld [vmem:[%s4288_s2 + $0xb0] sm:$0xff] }
 0x1e2   : > { %v757_v24 = vpop.f32.mrf.mxu1 }
 0x1e4   : > { %v760_v25 = vpop.f32.mrf.mxu1 }
 0x1e5   : > { %3195 = vmatprep.mubr.msk.f32.mxu0 %vm372_vm2, %v760_v25 }
 0x1e6   : > { %v762_v26 = vpop.f32.mrf.mxu1 }
 0x1e8   : > { %v765_v27 = vpop.f32.mrf.mxu1 }
 0x1e9   : > { %3196 = vmatmul.mubr.msk.f32.gmra.mxu0 %vm372_vm2, %v765_v27 }
 0x1ea   : > { %v767_v28 = vpop.f32.mrf.mxu1 }
 0x1ec   : > { %v770_v29 = vpop.f32.mrf.mxu1 }
 0x1ed   : > { %3198 = vmatprep.mubr.msk.f32.mxu0 %vm372_vm2, %v770_v29 }
 0x1ee   : > { %v772_v30 = vpop.f32.mrf.mxu1 }
 0x1f0   : > { %v775_v31 = vpop.f32.mrf.mxu1 }
 0x1f1   : > { %3199 = vmatmul.mubr.msk.f32.gmra.mxu0 %vm372_vm2, %v775_v31 }
 0x1f2   : > { %v777_v32 = vpop.f32.mrf.mxu1 }
 0x299   : > { %v3191_v39 = vpop.f32.mrf.mxu0 }
 0x29a   : > { %v884_v40 = vadd.f32 %v3191_v39, %v2870_v38 }
 0x29b   : > { %v878_v41 = vpop.f32.mrf.mxu0 }
 0x29c   : > { %v879_v42 = vadd.f32 %v2870_v38, %v878_v41  ;;  %v918_v44 = vmax.f32 %v884_v40, 0.0 }
 0x29e   : > { %v917_v43 = vmax.f32 %v879_v42, 0.0 }
 0x2a0   : > { %3209 = vmatprep.mubr.msk.f32.mxu0 %vm372_vm2, %v917_v43 }
 0x2a1   : > { %v3194_v46 = vpop.f32.mrf.mxu0  ;;  %3210 = vmatmul.mubr.msk.f32.vlgmr.msra.gmra.mxu0 %vm372_vm2, %v918_v44 }
 0x2a2   : > { %3222 = vmatpush3.msra.mxu0 %v1069_v37  ;;  %v894_v48 = vadd.f32 %v3194_v46, %v2870_v38 }
 0x2a3   : > { %v888_v49 = vpop.f32.mrf.mxu0  ;;  %3223 = vmatprep.subr.mxu0 %v1068_v45 }
 0x2a4   : > { %v889_v50 = vadd.f32 %v2870_v38, %v888_v49  ;;  %3224 = vmatpush3.msra.mxu0 %v1068_v45  ;;  %v920_v54 = vmax.f32 %v894_v48, 0.0 }
 0x2a5   : > { %3225 = vmatprep.subr.mxu0 %v1067_v47 }
 0x2a6   : > { %v919_v52 = vmax.f32 %v889_v50, 0.0  ;;  %3226 = vmatpush3.msra.mxu0 %v1067_v47 }
 0x2a7   : > { %3227 = vmatprep.subr.mxu0 %v1066_v51 }
 0x2a8   : > { %3212 = vmatprep.mubr.msk.f32.mxu0 %vm372_vm2, %v919_v52  ;;  %3228 = vmatpush3.msra.mxu0 %v1066_v51 }
 0x2a9   : > { %v3197_v55 = vpop.f32.mrf.mxu0  ;;  %3213 = vmatmul.mubr.msk.f32.gmra.mxu0 %vm372_vm2, %v920_v54  ;;  %3241 = vmatprep.subr.mxu0 %v1186_v53 }
 0x2aa   : > { %v904_v56 = vadd.f32 %v3197_v55, %v2870_v38 }
 0x2ab   : > { %v898_v57 = vpop.f32.mrf.mxu0 }
 0x2ac   : > { %v899_v58 = vadd.f32 %v2870_v38, %v898_v57  ;;  %v922_v60 = vmax.f32 %v904_v56, 0.0 }
 0x2ae   : > { %v921_v59 = vmax.f32 %v899_v58, 0.0 }
 0x2b0   : > { %3215 = vmatprep.mubr.msk.f32.mxu0 %vm372_vm2, %v921_v59 }
 0x2b1   : > { %v3200_v61 = vpop.f32.mrf.mxu0  ;;  %3216 = vmatmul.mubr.msk.f32.gmra.mxu0 %vm372_vm2, %v922_v60 }
 0x2b2   : > { %v914_v63 = vadd.f32 %v3200_v61, %v2870_v38 }
 0x2b3   : > { %v908_v16 = vpop.f32.mrf.mxu0 }
 0x2b4   : > { %v909_v17 = vadd.f32 %v2870_v38, %v908_v16  ;;  %v924_v19 = vmax.f32 %v914_v63, 0.0 }
 0x2b6   : > { %v923_v18 = vmax.f32 %v909_v17, 0.0 }
 0x2b8   : > { %3218 = vmatprep.mubr.msk.f32.mxu0 %vm372_vm2, %v923_v18 }
 0x2b9   : > { %3219 = vmatmul.mubr.msk.f32.gmra.mxu0 %vm372_vm2, %v924_v19 }
 0x2ba   : > { %3229 = vmatprep.mubr.msk.f32.mxu0 %vm372_vm2, %v917_v43 }
 0x2bd   : > { %3230 = vmatmul.mubr.msk.f32.vlgmr.msra.gmra.mxu0 %vm372_vm2, %v918_v44 }
 0x2be   : > { %3232 = vmatprep.mubr.msk.f32.mxu0 %vm372_vm2, %v919_v52  ;;  %3242 = vmatpush3.msra.mxu0 %v1186_v53 }
 0x2bf   : > { %3243 = vmatprep.subr.mxu0 %v1185_v20 }
 0x2c0   : > { %3244 = vmatpush3.msra.mxu0 %v1185_v20 }
 0x2c1   : > { %3233 = vmatmul.mubr.msk.f32.gmra.mxu0 %vm372_vm2, %v920_v54  ;;  %3245 = vmatprep.subr.mxu0 %v1184_v12 }
 0x2c2   : > { %3235 = vmatprep.mubr.msk.f32.mxu0 %vm372_vm2, %v921_v59  ;;  %3246 = vmatpush3.msra.mxu0 %v1184_v12 }
 0x2c3   : > { %3247 = vmatprep.subr.mxu0 %v1183_v21 }
 0x2c4   : > { %3248 = vmatpush3.msra.mxu0 %v1183_v21 }
 0x2c5   : > { %3236 = vmatmul.mubr.msk.f32.gmra.mxu0 %vm372_vm2, %v922_v60  ;;  %3261 = vmatprep.subr.mxu0 %v1472_v22 }
 0x2c6   : > { %3238 = vmatprep.mubr.msk.f32.mxu0 %vm372_vm2, %v923_v18 }
 0x2c9   : > { %3239 = vmatmul.mubr.msk.f32.gmra.mxu0 %vm372_vm2, %v924_v19 }
 0x2ca   : > { %3249 = vmatprep.mubr.msk.f32.mxu0 %vm372_vm2, %v917_v43 }
 0x2cd   : > { %3250 = vmatmul.mubr.msk.f32.vlgmr.msra.gmra.mxu0 %vm372_vm2, %v918_v44 }
 0x2ce   : > { %3252 = vmatprep.mubr.msk.f32.mxu0 %vm372_vm2, %v919_v52  ;;  %3262 = vmatpush3.msra.mxu0 %v1472_v22 }
 0x2cf   : > { %3263 = vmatprep.subr.mxu0 %v1471_v23 }
 0x2d0   : > { %3264 = vmatpush3.msra.mxu0 %v1471_v23 }
 0x2d1   : > { %3253 = vmatmul.mubr.msk.f32.gmra.mxu0 %vm372_vm2, %v920_v54 }
 0x2d2   : > { %3255 = vmatprep.mubr.msk.f32.mxu0 %vm372_vm2, %v921_v59 }
 0x2d5   : > { %3256 = vmatmul.mubr.msk.f32.gmra.mxu0 %vm372_vm2, %v922_v60 }
 0x2d6   : > { %3258 = vmatprep.mubr.msk.f32.mxu0 %vm372_vm2, %v923_v18 }
 0x2d9   : > { %3259 = vmatmul.mubr.msk.f32.gmra.mxu0 %vm372_vm2, %v924_v19 }
 0x361   : > { %v3211_v24 = vpop.f32.mrf.mxu0 }
 0x362   : > { %1059 = vst.msk [vmem:[#allocation2 + $0x8] sm:$0xff] %vm372_vm2, %v3211_v24 }
 0x363   : > { %v1019_v25 = vpop.f32.mrf.mxu0 }
 0x364   : > { %1058 = vst.msk [vmem:[#allocation2] sm:$0xff] %vm372_vm2, %v1019_v25 }
 0x369   : > { %v3214_v26 = vpop.f32.mrf.mxu0  ;;  %v1317_v63 = vld [vmem:[#allocation2 + $0x8] sm:$0xff] }
 0x36a   : > { %1061 = vst.msk [vmem:[#allocation2 + $0x18] sm:$0xff] %vm372_vm2, %v3214_v26 }
 0x36b   : > { %v1029_v27 = vpop.f32.mrf.mxu0  ;;  %v1316_v16 = vld [vmem:[#allocation2] sm:$0xff] }
 0x36c   : > { %1060 = vst.msk [vmem:[#allocation2 + $0x10] sm:$0xff] %vm372_vm2, %v1029_v27  ;;  %v1678_v27 = vld [vmem:[%s4288_s2 + $0x100] sm:$0xff] }
 0x371   : > { %v3217_v28 = vpop.f32.mrf.mxu0  ;;  %v1319_v60 = vld [vmem:[#allocation2 + $0x18] sm:$0xff] }
 0x372   : > { %1063 = vst.msk [vmem:[#allocation2 + $0x28] sm:$0xff] %vm372_vm2, %v3217_v28  ;;  %v1677_v28 = vld [vmem:[%s4288_s2 + $0xf8] sm:$0xff] }
 0x373   : > { %v1039_v29 = vpop.f32.mrf.mxu0  ;;  %v1318_v61 = vld [vmem:[#allocation2 + $0x10] sm:$0xff] }
 0x374   : > { %1062 = vst.msk [vmem:[#allocation2 + $0x20] sm:$0xff] %vm372_vm2, %v1039_v29  ;;  %v1676_v29 = vld [vmem:[%s4288_s2 + $0xf0] sm:$0xff] }
 0x379   : > { %v3220_v30 = vpop.f32.mrf.mxu0  ;;  %v1321_v58 = vld [vmem:[#allocation2 + $0x28] sm:$0xff] }
 0x37a   : > { %1065 = vst.msk [vmem:[#allocation2 + $0x38] sm:$0xff] %vm372_vm2, %v3220_v30  ;;  %v2911_v30 = vld [vmem:[%s4288_s2 + $0xc0] ss:$0 sm:$0xff] }
 0x37b   : > { %v1049_v31 = vpop.f32.mrf.mxu0  ;;  %v1320_v59 = vld [vmem:[#allocation2 + $0x20] sm:$0xff] }
 0x37c   : > { %1064 = vst.msk [vmem:[#allocation2 + $0x30] sm:$0xff] %vm372_vm2, %v1049_v31 }
 0x37d   : > { %v3231_v32 = vpop.f32.mrf.mxu0 }
 0x37e   : > { %1176 = vst.msk [vmem:[#allocation2 + $0x48] sm:$0xff] %vm372_vm2, %v3231_v32 }
 0x37f   : > { %v1136_v33 = vpop.f32.mrf.mxu0 }
 0x380   : > { %1175 = vst.msk [vmem:[#allocation2 + $0x40] sm:$0xff] %vm372_vm2, %v1136_v33 }
 0x381   : > { %v3234_v34 = vpop.f32.mrf.mxu0  ;;  %v1323_v56 = vld [vmem:[#allocation2 + $0x38] sm:$0xff] }
 0x382   : > { %1178 = vst.msk [vmem:[#allocation2 + $0x58] sm:$0xff] %vm372_vm2, %v3234_v34 }
 0x383   : > { %v1146_v35 = vpop.f32.mrf.mxu0  ;;  %v1322_v57 = vld [vmem:[#allocation2 + $0x30] sm:$0xff] }
 0x384   : > { %1177 = vst.msk [vmem:[#allocation2 + $0x50] sm:$0xff] %vm372_vm2, %v1146_v35 }
 0x385   : > { %v3237_v36 = vpop.f32.mrf.mxu0  ;;  %v1325_v54 = vld [vmem:[#allocation2 + $0x48] sm:$0xff] }
 0x386   : > { %1180 = vst.msk [vmem:[#allocation2 + $0x68] sm:$0xff] %vm372_vm2, %v3237_v36 }
 0x387   : > { %v1156_v37 = vpop.f32.mrf.mxu0  ;;  %v1324_v55 = vld [vmem:[#allocation2 + $0x40] sm:$0xff] }
 0x388   : > { %1179 = vst.msk [vmem:[#allocation2 + $0x60] sm:$0xff] %vm372_vm2, %v1156_v37 }
 0x389   : > { %v3240_v38 = vpop.f32.mrf.mxu0  ;;  %v1327_v51 = vld [vmem:[#allocation2 + $0x58] sm:$0xff] }
 0x38a   : > { %1182 = vst.msk [vmem:[#allocation2 + $0x78] sm:$0xff] %vm372_vm2, %v3240_v38 }
 0x38b   : > { %v1166_v39 = vpop.f32.mrf.mxu0  ;;  %v1326_v53 = vld [vmem:[#allocation2 + $0x50] sm:$0xff] }
 0x38c   : > { %1181 = vst.msk [vmem:[#allocation2 + $0x70] sm:$0xff] %vm372_vm2, %v1166_v39 }
 0x38d   : > { %v3251_v40 = vpop.f32.mrf.mxu0  ;;  %v1329_v47 = vld [vmem:[#allocation2 + $0x68] sm:$0xff] }
 0x38e   : > { %1293 = vst.msk [vmem:[#allocation2 + $0x88] sm:$0xff] %vm372_vm2, %v3251_v40 }
 0x38f   : > { %v1253_v41 = vpop.f32.mrf.mxu0  ;;  %v1328_v49 = vld [vmem:[#allocation2 + $0x60] sm:$0xff] }
 0x390   : > { %1292 = vst.msk [vmem:[#allocation2 + $0x80] sm:$0xff] %vm372_vm2, %v1253_v41 }
 0x391   : > { %v3254_v42 = vpop.f32.mrf.mxu0  ;;  %v1331_v43 = vld [vmem:[#allocation2 + $0x78] sm:$0xff] }
 0x392   : > { %1295 = vst.msk [vmem:[#allocation2 + $0x98] sm:$0xff] %vm372_vm2, %v3254_v42  ;;  %1365 = vmatpush1.msra.mxu1 %v1331_v43 }
 0x393   : > { %v1263_v44 = vpop.f32.mrf.mxu0  ;;  %1366 = vmatprep.subr.mxu1 %v3492_v11  ;;  %v1330_v45 = vld [vmem:[#allocation2 + $0x70] sm:$0xff] }
 0x394   : > { %1294 = vst.msk [vmem:[#allocation2 + $0x90] sm:$0xff] %vm372_vm2, %v1263_v44  ;;  %1367 = vmatpush1.msra.mxu1 %v1330_v45 }
 0x395   : > { %v3257_v46 = vpop.f32.mrf.mxu0  ;;  %1368 = vmatprep.subr.mxu1 %v3492_v11  ;;  %v1333_v22 = vld [vmem:[#allocation2 + $0x88] sm:$0xff] }
 0x396   : > { %1297 = vst.msk [vmem:[#allocation2 + $0xa8] sm:$0xff] %vm372_vm2, %v3257_v46  ;;  %1369 = vmatpush1.msra.mxu1 %v1329_v47 }
 0x397   : > { %v1273_v48 = vpop.f32.mrf.mxu0  ;;  %1370 = vmatprep.subr.mxu1 %v3492_v11  ;;  %v1332_v23 = vld [vmem:[#allocation2 + $0x80] sm:$0xff] }
 0x398   : > { %1296 = vst.msk [vmem:[#allocation2 + $0xa0] sm:$0xff] %vm372_vm2, %v1273_v48  ;;  %1371 = vmatpush1.msra.mxu1 %v1328_v49 }
 0x399   : > { %v3260_v50 = vpop.f32.mrf.mxu0  ;;  %1372 = vmatprep.subr.mxu1 %v3492_v11  ;;  %v1335_v12 = vld [vmem:[#allocation2 + $0x98] sm:$0xff] }
 0x39a   : > { %1299 = vst.msk [vmem:[#allocation2 + $0xb8] sm:$0xff] %vm372_vm2, %v3260_v50  ;;  %1373 = vmatpush1.msra.mxu1 %v1327_v51 }
 0x39b   : > { %v1283_v52 = vpop.f32.mrf.mxu0  ;;  %1374 = vmatprep.subr.mxu1 %v3492_v11  ;;  %v1334_v21 = vld [vmem:[#allocation2 + $0x90] sm:$0xff] }
 0x39c   : > { %1298 = vst.msk [vmem:[#allocation2 + $0xb0] sm:$0xff] %vm372_vm2, %v1283_v52  ;;  %1375 = vmatpush1.msra.mxu1 %v1326_v53 }
 0x39d   : > { %1376 = vmatprep.subr.mxu1 %v3492_v11  ;;  %v1337_v19 = vld [vmem:[#allocation2 + $0xa8] sm:$0xff] }
 0x39e   : > { %1377 = vmatpush1.msra.mxu1 %v1325_v54 }
 0x39f   : > { %1378 = vmatprep.subr.mxu1 %v3492_v11  ;;  %v1336_v20 = vld [vmem:[#allocation2 + $0xa0] sm:$0xff] }
 0x3a0   : > { %1379 = vmatpush1.msra.mxu1 %v1324_v55 }
 0x3a1   : > { %1380 = vmatprep.subr.mxu1 %v3492_v11  ;;  %v1339_v17 = vld [vmem:[#allocation2 + $0xb8] sm:$0xff] }
 0x3a2   : > { %1381 = vmatpush1.msra.mxu1 %v1323_v56 }
 0x3a3   : > { %1382 = vmatprep.subr.mxu1 %v3492_v11  ;;  %v1338_v18 = vld [vmem:[#allocation2 + $0xb0] sm:$0xff] }
 0x3a4   : > { %1383 = vmatpush1.msra.mxu1 %v1322_v57 }
 0x3a5   : > { %1384 = vmatprep.subr.mxu1 %v3492_v11 }
 0x3a6   : > { %1385 = vmatpush1.msra.mxu1 %v1321_v58  ;;  %v1675_v58 = vld [vmem:[%s4288_s2 + $0xe8] sm:$0xff] }
 0x3a7   : > { %1386 = vmatprep.subr.mxu1 %v3492_v11 }
 0x3a8   : > { %1387 = vmatpush1.msra.mxu1 %v1320_v59 }
 0x3a9   : > { %1388 = vmatprep.subr.mxu1 %v3492_v11 }
 0x3aa   : > { %1389 = vmatpush1.msra.mxu1 %v1319_v60 }
 0x3ab   : > { %1390 = vmatprep.subr.mxu1 %v3492_v11 }
 0x3ac   : > { %1391 = vmatpush1.msra.mxu1 %v1318_v61 }
 0x3ad   : > { %1392 = vmatprep.subr.mxu1 %v3492_v11 }
 0x3ae   : > { %1393 = vmatpush1.msra.mxu1 %v1317_v63 }
 0x3af   : > { %1394 = vmatprep.subr.mxu1 %v3492_v11 }
 0x3b0   : > { %1395 = vmatpush1.msra.mxu1 %v1316_v16 }
 0x3b1   : > { %1412 = vmatprep.subr.mxu1 %v3492_v11 }
 0x3b2   : > { %1413 = vmatpush2.msra.mxu1 %v1339_v17  ;;  %v1674_v17 = vld [vmem:[%s4288_s2 + $0xe0] sm:$0xff] }
 0x3b3   : > { %1414 = vmatprep.subr.mxu1 %v3492_v11 }
 0x3b4   : > { %1415 = vmatpush2.msra.mxu1 %v1338_v18 }
 0x3b5   : > { %1416 = vmatprep.subr.mxu1 %v3492_v11 }
 0x3b6   : > { %1417 = vmatpush2.msra.mxu1 %v1337_v19 }
 0x3b7   : > { %1418 = vmatprep.subr.mxu1 %v3492_v11 }
 0x3b8   : > { %1419 = vmatpush2.msra.mxu1 %v1336_v20 }
 0x3b9   : > { %1420 = vmatprep.subr.mxu1 %v3492_v11 }
 0x3ba   : > { %1421 = vmatpush2.msra.mxu1 %v1335_v12 }
 0x3bb   : > { %1422 = vmatprep.subr.mxu1 %v3492_v11 }
 0x3bc   : > { %1423 = vmatpush2.msra.mxu1 %v1334_v21 }
 0x3bd   : > { %1424 = vmatprep.subr.mxu1 %v3492_v11 }
 0x3be   : > { %1425 = vmatpush2.msra.mxu1 %v1333_v22  ;;  %v1673_v22 = vld [vmem:[%s4288_s2 + $0xd8] sm:$0xff] }
 0x3bf   : > { %1426 = vmatprep.subr.mxu1 %v3492_v11 }
 0x3c0   : > { %1427 = vmatpush2.msra.mxu1 %v1332_v23 }
 0x3c1   : > { %1429 = vmatmul.mubr.f32.vlgmr.msra.gmra.mxu1 %v3633_v62  ;;  %v1470_v62 = vld [vmem:[%s4288_s2 + $0xa8] sm:$0xff]  ;;  %3309 = vmatprep.subr.mxu1 %v1678_v27 }
 0x3c2   : > { %2904 = vmatprep.mubr.msk.f32.mxu1 %vm649_vm1, %v3637_v0  ;;  %3265 = vmatprep.subr.mxu0 %v1470_v62  ;;  %v1469_v0 = vld [vmem:[%s4288_s2 + $0xa0] sm:$0xff] }
 0x3c3   : > { %3266 = vmatpush3.msra.mxu0 %v1470_v62  ;;  %3310 = vmatpush3.msra.mxu1 %v1678_v27 }
 0x3c4   : > { %3267 = vmatprep.subr.mxu0 %v1469_v0  ;;  %3311 = vmatprep.subr.mxu1 %v1677_v28 }
 0x3c5   : > { %1434 = vmatmul.mubr.f32.gmra.mxu1 %v3644_v1  ;;  %3268 = vmatpush3.msra.mxu0 %v1469_v0 }
 0x3c6   : > { %2905 = vmatprep.mubr.msk.f32.mxu1 %vm649_vm1, %v3647_v2  ;;  %3281 = vmatprep.subr.msk.mxu0 %vm372_vm2, %v1678_v27 }
 0x3c7   : > { %3312 = vmatpush3.msra.mxu1 %v1677_v28 }
 0x3c8   : > { %3313 = vmatprep.subr.mxu1 %v1676_v29 }
 0x3c9   : > { %1439 = vmatmul.mubr.f32.gmra.mxu1 %v3653_v3 }
 0x3ca   : > { %2906 = vmatprep.mubr.msk.f32.mxu1 %vm649_vm1, %v3656_v4  ;;  %3314 = vmatpush3.msra.mxu1 %v1676_v29 }
 0x3cb   : > { %3315 = vmatprep.subr.mxu1 %v1675_v58 }
 0x3cc   : > { %3316 = vmatpush3.msra.mxu1 %v1675_v58 }
 0x3cd   : > { %1444 = vmatmul.mubr.f32.gmra.mxu1 %v3662_v5  ;;  %3317 = vmatprep.subr.mxu1 %v1674_v17 }
 0x3ce   : > { %2907 = vmatprep.mubr.msk.f32.mxu1 %vm649_vm1, %v3665_v6  ;;  %3318 = vmatpush3.msra.mxu1 %v1674_v17 }
 0x3cf   : > { %3319 = vmatprep.subr.mxu1 %v1673_v22 }
 0x3d0   : > { %3320 = vmatpush3.msra.mxu1 %v1673_v22 }
 0x3d1   : > { %1449 = vmatmul.mubr.f32.gmra.mxu1 %v3671_v7 }
 0x3d2   : > { %2908 = vmatprep.mubr.msk.f32.mxu1 %vm649_vm1, %v3674_v8 }
 0x3d5   : > { %1454 = vmatmul.mubr.f32.gmra.mxu1 %v3680_v9 }
 0x3d6   : > { %2909 = vmatprep.mubr.msk.f32.mxu1 %vm649_vm1, %v3683_v10 }
 0x3d9   : > { %1459 = vmatmul.mubr.f32.gmra.mxu1 %v3689_v13 }
 0x3da   : > { %2910 = vmatprep.mubr.msk.f32.mxu1 %vm649_vm1, %v3692_v14 }
 0x3dd   : > { %1464 = vmatmul.mubr.f32.gmra.mxu1 %v3698_v15 }
 0x481   : > { %v1430_v1 = vpop.f32.mrf.mxu1 }
 0x482   : > { %3269 = vmatprep.mubr.msk.f32.mxu0 %vm372_vm2, %v1430_v1  ;;  %v1672_v1 = vld [vmem:[%s4288_s2 + $0xd0] sm:$0xff] }
 0x483   : > { %v1432_v2 = vpop.f32.mrf.mxu1  ;;  %3321 = vmatprep.subr.mxu1 %v1672_v1 }
 0x484   : > { %3322 = vmatpush3.msra.mxu1 %v1672_v1  ;;  %v1671_v2 = vld [vmem:[%s4288_s2 + $0xc8] sm:$0xff] }
 0x485   : > { %v1435_v3 = vpop.f32.mrf.mxu1  ;;  %3323 = vmatprep.subr.mxu1 %v1671_v2 }
 0x486   : > { %3270 = vmatmul.mubr.msk.f32.vlgmr.msra.gmra.mxu0 %vm372_vm2, %v1435_v3  ;;  %3324 = vmatpush3.msra.mxu1 %v1671_v2 }
 0x487   : > { %v1437_v4 = vpop.f32.mrf.mxu1  ;;  %3282 = vmatpush3.xpose.msk.msra.mxu0 %vm372_vm2, %v1678_v27  ;;  %3356 = vmatprep.subr.mxu1 %v3492_v11 }
 0x488   : > { %3283 = vmatprep.subr.msk.mxu0 %vm372_vm2, %v1677_v28 }
 0x489   : > { %v1440_v5 = vpop.f32.mrf.mxu1 }
 0x48a   : > { %3272 = vmatprep.mubr.msk.f32.mxu0 %vm372_vm2, %v1440_v5 }
 0x48b   : > { %v1442_v6 = vpop.f32.mrf.mxu1  ;;  %3284 = vmatpush3.xpose.msk.msra.mxu0 %vm372_vm2, %v1677_v28 }
 0x48c   : > { %3285 = vmatprep.subr.msk.mxu0 %vm372_vm2, %v1676_v29 }
 0x48d   : > { %v1445_v7 = vpop.f32.mrf.mxu1 }
 0x48e   : > { %3273 = vmatmul.mubr.msk.f32.gmra.mxu0 %vm372_vm2, %v1445_v7 }
 0x48f   : > { %v1447_v8 = vpop.f32.mrf.mxu1  ;;  %3286 = vmatpush3.xpose.msk.msra.mxu0 %vm372_vm2, %v1676_v29 }
 0x490   : > { %3287 = vmatprep.subr.msk.mxu0 %vm372_vm2, %v1675_v58 }
 0x491   : > { %v1450_v9 = vpop.f32.mrf.mxu1 }
 0x492   : > { %3275 = vmatprep.mubr.msk.f32.mxu0 %vm372_vm2, %v1450_v9 }
 0x493   : > { %v1452_v10 = vpop.f32.mrf.mxu1  ;;  %3288 = vmatpush3.xpose.msk.msra.mxu0 %vm372_vm2, %v1675_v58 }
 0x494   : > { %3289 = vmatprep.subr.msk.mxu0 %vm372_vm2, %v1674_v17 }
 0x495   : > { %v1455_v13 = vpop.f32.mrf.mxu1 }
 0x496   : > { %3276 = vmatmul.mubr.msk.f32.gmra.mxu0 %vm372_vm2, %v1455_v13 }
 0x497   : > { %v1457_v14 = vpop.f32.mrf.mxu1  ;;  %3290 = vmatpush3.xpose.msk.msra.mxu0 %vm372_vm2, %v1674_v17 }
 0x498   : > { %3291 = vmatprep.subr.msk.mxu0 %vm372_vm2, %v1673_v22 }
 0x499   : > { %v1460_v15 = vpop.f32.mrf.mxu1 }
 0x49a   : > { %3278 = vmatprep.mubr.msk.f32.mxu0 %vm372_vm2, %v1460_v15 }
 0x49b   : > { %v1462_v24 = vpop.f32.mrf.mxu1  ;;  %3292 = vmatpush3.xpose.msk.msra.mxu0 %vm372_vm2, %v1673_v22 }
 0x49c   : > { %3293 = vmatprep.subr.msk.mxu0 %vm372_vm2, %v1672_v1 }
 0x49d   : > { %v1465_v25 = vpop.f32.mrf.mxu1 }
 0x49e   : > { %3279 = vmatmul.mubr.msk.f32.gmra.mxu0 %vm372_vm2, %v1465_v25 }
 0x49f   : > { %v1467_v26 = vpop.f32.mrf.mxu1  ;;  %3294 = vmatpush3.xpose.msk.msra.mxu0 %vm372_vm2, %v1672_v1 }
 0x4a0   : > { %3295 = vmatprep.subr.msk.mxu0 %vm372_vm2, %v1671_v2 }
 0x4a3   : > { %3296 = vmatpush3.xpose.msk.msra.mxu0 %vm372_vm2, %v1671_v2 }
 0x4a4   : > { %3337 = vmatprep.subr.mxu0 %v3492_v11 }
 0x546   : > { %v3271_v31 = vpop.f32.mrf.mxu0 }
 0x547   : > { %v1574_v32 = vadd.f32 %v3271_v31, %v2911_v30 }
 0x548   : > { %v1568_v33 = vpop.f32.mrf.mxu0 }
 0x549   : > { %v1569_v34 = vadd.f32 %v2911_v30, %v1568_v33  ;;  %v3887_v35 = vmax.f32 %v1574_v32, 0.0 }
 0x54b   : > { %v3889_v36 = vmax.f32 %v1569_v34, 0.0  ;;  %v1616_v41 = vmul.f32 %v3887_v35, %v3887_v35 }
 0x54d   : > { %v1615_v37 = vmul.f32 %v3889_v36, %v3889_v36  ;;  %v1626_v46 = vsel %vm372_vm2, %v1616_v41, 0.0 }
 0x54e   : > { %v3274_v38 = vpop.f32.mrf.mxu0 }
 0x54f   : > { %v1584_v39 = vadd.f32 %v3274_v38, %v2911_v30  ;;  %v1623_v40 = vsel %vm372_vm2, %v1615_v37, 0.0 }
 0x550   : > { %1624 = vadd.xlane.f32.xlu0 %v1623_v40  ;;  %v1578_v42 = vpop.f32.mrf.mxu0 }
 0x551   : > { %v1579_v43 = vadd.f32 %v2911_v30, %v1578_v42  ;;  %v3896_v44 = vmax.f32 %v1584_v39, 0.0 }
 0x553   : > { %v3898_v45 = vmax.f32 %v1579_v43, 0.0  ;;  %v1618_v51 = vmul.f32 %v3896_v44, %v3896_v44 }
 0x554   : > { %1627 = vadd.xlane.f32.xlu0 %v1626_v46 }
 0x555   : > { %v1617_v47 = vmul.f32 %v3898_v45, %v3898_v45  ;;  %v1632_v56 = vsel %vm372_vm2, %v1618_v51, 0.0 }
 0x556   : > { %v3277_v48 = vpop.f32.mrf.mxu0 }
 0x557   : > { %v1594_v49 = vadd.f32 %v3277_v48, %v2911_v30  ;;  %v1629_v50 = vsel %vm372_vm2, %v1617_v47, 0.0 }
 0x558   : > { %1630 = vadd.xlane.f32.xlu1 %v1629_v50  ;;  %v1588_v52 = vpop.f32.mrf.mxu0 }
 0x559   : > { %v3906_v53 = vmax.f32 %v1594_v49, 0.0  ;;  %v1589_v54 = vadd.f32 %v2911_v30, %v1588_v52 }
 0x55b   : > { %v3908_v55 = vmax.f32 %v1589_v54, 0.0  ;;  %v1620_v57 = vmul.f32 %v3906_v53, %v3906_v53 }
 0x55c   : > { %1633 = vadd.xlane.f32.xlu1 %v1632_v56 }
 0x55d   : > { %v1619_v59 = vmul.f32 %v3908_v55, %v3908_v55  ;;  %v1638_v63 = vsel %vm372_vm2, %v1620_v57, 0.0 }
 0x55e   : > { %v3280_v60 = vpop.f32.mrf.mxu0 }
 0x55f   : > { %v1604_v61 = vadd.f32 %v3280_v60, %v2911_v30  ;;  %v1635_v16 = vsel %vm372_vm2, %v1619_v59, 0.0 }
 0x560   : > { %1639 = vadd.xlane.f32.xlu1 %v1638_v63  ;;  %1636 = vadd.xlane.f32.xlu0 %v1635_v16  ;;  %v1598_v18 = vpop.f32.mrf.mxu0 }
 0x561   : > { %v3925_v19 = vmax.f32 %v1604_v61, 0.0  ;;  %v1599_v20 = vadd.f32 %v2911_v30, %v1598_v18 }
 0x563   : > { %v3929_v12 = vmax.f32 %v1599_v20, 0.0  ;;  %v1622_v21 = vmul.f32 %v3925_v19, %v3925_v19 }
 0x565   : > { %v1644_v23 = vsel %vm372_vm2, %v1622_v21, 0.0  ;;  %v1621_v62 = vmul.f32 %v3929_v12, %v3929_v12  ;;  %v1856_v21 = vlaneseq }
 0x566   : > { %1645 = vadd.xlane.f32.xlu1 %v1644_v23 }
 0x567   : > { %v1641_v0 = vsel %vm372_vm2, %v1621_v62, 0.0  ;;  %v3984_v22 = vand.u32 127, %v1856_v21 }
 0x568   : > { %1642 = vadd.xlane.f32.xlu0 %v1641_v0 }
 0x5d9   : > { %v1625_v3 = vpop.xlane.xlu0 %1624 }
 0x5da   : > { %v1647_v4 = vmax.f32 %v1625_v3, 1e-24 }
 0x5dc   : > { %3468 = vrsqrt.f32 %v1647_v4 }
 0x5dd   : > { %v1628_v5 = vpop.xlane.xlu0 %1627 }
 0x5de   : > { %v1648_v6 = vmax.f32 %v1628_v5, 1e-24 }
 0x5e0   : > { %3470 = vrsqrt.f32 %v1648_v6 }
 0x5e1   : > { %v1631_v7 = vpop.xlane.xlu1 %1630 }
 0x5e2   : > { %v1649_v8 = vmax.f32 %v1631_v7, 1e-24 }
 0x5e4   : > { %3472 = vrsqrt.f32 %v1649_v8 }
 0x5e5   : > { %v1634_v9 = vpop.xlane.xlu1 %1633 }
 0x5e6   : > { %v1650_v10 = vmax.f32 %v1634_v9, 1e-24 }
 0x5e8   : > { %3474 = vrsqrt.f32 %v1650_v10 }
 0x5e9   : > { %v3469_v13 = vpop.eup %3468  ;;  %v1640_v14 = vpop.xlane.xlu1 %1639 }
 0x5ea   : > { %v1637_v15 = vpop.xlane.xlu0 %1636  ;;  %v1652_v24 = vmax.f32 %v1640_v14, 1e-24  ;;  %v1663_v26 = vmul.f32 %v3469_v13, %v3889_v36 }
 0x5eb   : > { %v1651_v25 = vmax.f32 %v1637_v15, 1e-24 }
 0x5ec   : > { %3476 = vrsqrt.f32 %v1652_v24  ;;  %3297 = vmatprep.mubr.msk.f32.mxu0 %vm372_vm2, %v1663_v26 }
 0x5ed   : > { %v3471_v27 = vpop.eup %3470  ;;  %3478 = vrsqrt.f32 %v1651_v25 }
 0x5ee   : > { %v1664_v28 = vmul.f32 %v3471_v27, %v3887_v35 }
 0x5ef   : > { %v1646_v29 = vpop.xlane.xlu1 %1645 }
 0x5f0   : > { %v1654_v30 = vmax.f32 %v1646_v29, 1e-24  ;;  %3298 = vmatmul.mubr.msk.f32.vlgmr.msra.gmra.mxu0 %vm372_vm2, %v1664_v28 }
 0x5f1   : > { %v3473_v31 = vpop.eup %3472  ;;  %v1643_v32 = vpop.xlane.xlu0 %1642 }
 0x5f2   : > { %v1653_v33 = vmax.f32 %v1643_v32, 1e-24  ;;  %v1665_v34 = vmul.f32 %v3473_v31, %v3898_v45  ;;  %3480 = vrsqrt.f32 %v1654_v30 }
 0x5f4   : > { %3482 = vrsqrt.f32 %v1653_v33  ;;  %3300 = vmatprep.mubr.msk.f32.mxu0 %vm372_vm2, %v1665_v34 }
 0x5f5   : > { %v3475_v37 = vpop.eup %3474 }
 0x5f6   : > { %v1666_v38 = vmul.f32 %v3475_v37, %v3896_v44 }
 0x5f8   : > { %3301 = vmatmul.mubr.msk.f32.gmra.mxu0 %vm372_vm2, %v1666_v38 }
 0x5f9   : > { %v3477_v39 = vpop.eup %3476 }
 0x5fa   : > { %v3479_v40 = vpop.eup %3478  ;;  %v1668_v41 = vmul.f32 %v3477_v39, %v3906_v53 }
 0x5fb   : > { %v1667_v42 = vmul.f32 %v3479_v40, %v3908_v55 }
 0x5fd   : > { %3303 = vmatprep.mubr.msk.f32.mxu0 %vm372_vm2, %v1667_v42 }
 0x5fe   : > { %3304 = vmatmul.mubr.msk.f32.gmra.mxu0 %vm372_vm2, %v1668_v41 }
 0x5ff   : > { %v3481_v43 = vpop.eup %3480 }
 0x600   : > { %v1670_v48 = vmul.f32 %v3481_v43, %v3925_v19 }
 0x601   : > { %v3483_v46 = vpop.eup %3482 }
 0x602   : > { %v1669_v47 = vmul.f32 %v3483_v46, %v3929_v12 }
 0x604   : > { %3306 = vmatprep.mubr.msk.f32.mxu0 %vm372_vm2, %v1669_v47 }
 0x605   : > { %3307 = vmatmul.mubr.msk.f32.gmra.mxu0 %vm372_vm2, %v1670_v48 }
 0x6b0   : > { %v3299_v49 = vpop.f32.mrf.mxu0 }
 0x6b1   : > { %v1835_v50 = vsel %vm649_vm1, %v3299_v49, -inf }
 0x6b2   : > { %1836 = vmax.xlane.f32.xlu1 %v1835_v50  ;;  %v1793_v51 = vpop.f32.mrf.mxu0 }
 0x6b3   : > { %v1832_v52 = vsel %vm649_vm1, %v1793_v51, -inf }
 0x6b4   : > { %1833 = vmax.xlane.f32.xlu0 %v1832_v52 }
 0x6b8   : > { %v3302_v54 = vpop.f32.mrf.mxu0 }
 0x6b9   : > { %v1841_v56 = vsel %vm649_vm1, %v3302_v54, -inf }
 0x6ba   : > { %1842 = vmax.xlane.f32.xlu1 %v1841_v56  ;;  %v1803_v57 = vpop.f32.mrf.mxu0 }
 0x6bb   : > { %v1838_v58 = vsel %vm649_vm1, %v1803_v57, -inf }
 0x6bc   : > { %1839 = vmax.xlane.f32.xlu0 %v1838_v58 }
 0x6be   : > { %v3305_v59 = vpop.f32.mrf.mxu0 }
 0x6bf   : > { %v1847_v60 = vsel %vm649_vm1, %v3305_v59, -inf }
 0x6c0   : > { %1848 = vmax.xlane.f32.xlu1 %v1847_v60  ;;  %v1813_v61 = vpop.f32.mrf.mxu0 }
 0x6c1   : > { %v1844_v63 = vsel %vm649_vm1, %v1813_v61, -inf }
 0x6c2   : > { %1845 = vmax.xlane.f32.xlu0 %v1844_v63 }
 0x6c5   : > { %v3976_v16 = vpop.f32.mrf.mxu0 }
 0x6c6   : > { %v1853_v17 = vsel %vm649_vm1, %v3976_v16, -inf }
 0x6c7   : > { %1854 = vmax.xlane.f32.xlu1 %v1853_v17  ;;  %v3980_v18 = vpop.f32.mrf.mxu0 }
 0x6c8   : > { %v1850_v20 = vsel %vm649_vm1, %v3980_v18, -inf }
 0x6c9   : > { %1851 = vmax.xlane.f32.xlu0 %v1850_v20 }
 0x73b   : > { %v1837_v23 = vpop.xlane.xlu1 %1836 }
 0x73c   : > { %vm1859_vm4 = vcmp.eq.f32.partialorder %v3299_v49, %v1837_v23  ;;  %v2149_v1 = vsel %vm2147_vm3, %v1837_v23, 0.0 }
 0x73d   : > { %v1867_v62 = vsel %vm1859_vm4, %v3984_v22, 64  ;;  %v1834_v0 = vpop.xlane.xlu0 %1833 }
 0x73e   : > { %vm1858_vm5 = vcmp.eq.f32.partialorder %v1793_v51, %v1834_v0  ;;  %v2148_v2 = vsel %vm2147_vm3, %v1834_v0, 0.0  ;;  %v3990_v3 = vsel %vm649_vm1, %v1867_v62, 2147483647 }
 0x73f   : > { %v1866_v4 = vsel %vm1858_vm5, %v3984_v22, 64  ;;  %v2150_v5 = vadd.f32 %v2149_v1, %v2148_v2  ;;  %v1891_v6 = vshra.s32 %v3990_v3, 16  ;;  %v1890_v20 = vand.u32 65535, %v3990_v3 }
 0x740   : > { %v3995_v7 = vsel %vm649_vm1, %v1866_v4, 2147483647 }
 0x741   : > { %v1893_v8 = vcvt.s32.f32 %v1891_v6  ;;  %v1876_v9 = vshra.s32 %v3995_v7, 16  ;;  %v1875_v21 = vand.u32 65535, %v3995_v7  ;;  %v1892_v62 = vcvt.s32.f32 %v1890_v20 }
 0x743   : > { %v1843_v10 = vpop.xlane.xlu1 %1842  ;;  %1894 = vmin.xlane.f32.xlu1 %v1893_v8  ;;  %v1878_v13 = vcvt.s32.f32 %v1876_v9  ;;  %v1877_v1 = vcvt.s32.f32 %v1875_v21 }
 0x744   : > { %vm1861_vm6 = vcmp.eq.f32.partialorder %v3302_v54, %v1843_v10  ;;  %v2153_v29 = vsel %vm2147_vm3, %v1843_v10, 0.0 }
 0x745   : > { %v1869_v14 = vsel %vm1861_vm6, %v3984_v22, 64  ;;  %1879 = vmin.xlane.f32.xlu0 %v1878_v13  ;;  %v1840_v15 = vpop.xlane.xlu0 %1839 }
 0x746   : > { %vm1860_vm7 = vcmp.eq.f32.partialorder %v1803_v57, %v1840_v15  ;;  %v2151_v24 = vsel %vm2147_vm3, %v1840_v15, 0.0  ;;  %v1919_v25 = vsel %vm649_vm1, %v1869_v14, 2147483647 }
 0x747   : > { %v1868_v26 = vsel %vm1860_vm7, %v3984_v22, 64  ;;  %v2152_v27 = vadd.f32 %v2151_v24, %v2150_v5  ;;  %v1921_v28 = vshra.s32 %v1919_v25, 16  ;;  %v1920_v4 = vand.u32 65535, %v1919_v25 }
 0x748   : > { %v1904_v30 = vsel %vm649_vm1, %v1868_v26, 2147483647 }
 0x749   : > { %v1849_v31 = vpop.xlane.xlu1 %1848  ;;  %v2154_v32 = vadd.f32 %v2153_v29, %v2152_v27  ;;  %v1923_v33 = vcvt.s32.f32 %v1921_v28  ;;  %v1906_v34 = vshra.s32 %v1904_v30, 16  ;;  %v1905_v5 = vand.u32 65535, %v1904_v30 }
 0x74a   : > { %vm1863_vm8 = vcmp.eq.f32.partialorder %v3305_v59, %v1849_v31  ;;  %v2157_v47 = vsel %vm2147_vm3, %v1849_v31, 0.0  ;;  %v1922_v9 = vcvt.s32.f32 %v1920_v4 }
 0x74b   : > { %v1871_v37 = vsel %vm1863_vm8, %v3984_v22, 64  ;;  %v1846_v38 = vpop.xlane.xlu0 %1845  ;;  %1924 = vmin.xlane.f32.xlu1 %v1923_v33  ;;  %v1908_v39 = vcvt.s32.f32 %v1906_v34  ;;  %v1907_v3 = vcvt.s32.f32 %v1905_v5 }
 0x74c   : > { %vm1862_vm9 = vcmp.eq.f32.partialorder %v1813_v61, %v1846_v38  ;;  %v2155_v40 = vsel %vm2147_vm3, %v1846_v38, 0.0  ;;  %v1949_v41 = vsel %vm649_vm1, %v1871_v37, 2147483647 }
 0x74d   : > { %v1870_v42 = vsel %vm1862_vm9, %v3984_v22, 64  ;;  %v2156_v43 = vadd.f32 %v2155_v40, %v2154_v32  ;;  %1909 = vmin.xlane.f32.xlu0 %v1908_v39  ;;  %v1951_v46 = vshra.s32 %v1949_v41, 16  ;;  %v1950_v15 = vand.u32 65535, %v1949_v41 }
 0x74e   : > { %v1934_v48 = vsel %vm649_vm1, %v1870_v42, 2147483647 }
 0x74f   : > { %v1953_v49 = vcvt.s32.f32 %v1951_v46  ;;  %v1936_v50 = vshra.s32 %v1934_v48, 16  ;;  %v4010_v51 = vadd.f32 %v2157_v47, %v2156_v43  ;;  %v1952_v26 = vcvt.s32.f32 %v1950_v15 }
 0x750   : > { %v4012_v52 = vpop.xlane.xlu1 %1854 }
 0x751   : > { %1954 = vmin.xlane.f32.xlu1 %v1953_v49  ;;  %vm1865_vm10 = vcmp.eq.f32.partialorder %v3976_v16, %v4012_v52  ;;  %v1938_v54 = vcvt.s32.f32 %v1936_v50 }
 0x752   : > { %v1873_v56 = vsel %vm1865_vm10, %v3984_v22, 64  ;;  %v4017_v57 = vpop.xlane.xlu0 %1851 }
 0x753   : > { %1939 = vmin.xlane.f32.xlu0 %v1938_v54  ;;  %vm1864_vm11 = vcmp.eq.f32.partialorder %v3980_v18, %v4017_v57  ;;  %v1979_v58 = vsel %vm649_vm1, %v1873_v56, 2147483647 }
 0x754   : > { %v1872_v59 = vsel %vm1864_vm11, %v3984_v22, 64  ;;  %v1981_v60 = vshra.s32 %v1979_v58, 16  ;;  %v1980_v28 = vand.u32 65535, %v1979_v58 }
 0x755   : > { %v1964_v61 = vsel %vm649_vm1, %v1872_v59, 2147483647 }
 0x756   : > { %v1983_v63 = vcvt.s32.f32 %v1981_v60  ;;  %v1966_v17 = vshra.s32 %v1964_v61, 16  ;;  %v1965_v30 = vand.u32 65535, %v1964_v61  ;;  %v1982_v32 = vcvt.s32.f32 %v1980_v28 }
 0x758   : > { %1984 = vmin.xlane.f32.xlu1 %v1983_v63  ;;  %v1968_v16 = vcvt.s32.f32 %v1966_v17  ;;  %v1967_v37 = vcvt.s32.f32 %v1965_v30 }
 0x75a   : > { %1969 = vmin.xlane.f32.xlu0 %v1968_v16 }
 0x7cc   : > { %v1895_v23 = vpop.xlane.xlu1 %1894 }
 0x7cd   : > { %vm1896_vm12 = vcmp.eq.f32.partialorder %v1893_v8, %v1895_v23  ;;  %v1935_v8 = vand.u32 65535, %v1934_v48 }
 0x7ce   : > { %v1880_v18 = vpop.xlane.xlu0 %1879  ;;  %v1897_v0 = vsel %vm1896_vm12, %v1892_v62, inf }
 0x7cf   : > { %1898 = vmin.xlane.f32.xlu1 %v1897_v0  ;;  %vm1881_vm13 = vcmp.eq.f32.partialorder %v1878_v13, %v1880_v18  ;;  %v1937_v25 = vcvt.s32.f32 %v1935_v8  ;;  %v1886_v40 = vcvt.f32.s32 %v1880_v18 }
 0x7d0   : > { %v1882_v2 = vsel %vm1881_vm13, %v1877_v1, inf }
 0x7d1   : > { %1883 = vmin.xlane.f32.xlu0 %v1882_v2  ;;  %v1887_v47 = vshll.u32 %v1886_v40, 16 }
 0x7d4   : > { %v1925_v6 = vpop.xlane.xlu1 %1924 }
 0x7d5   : > { %vm1926_vm14 = vcmp.eq.f32.partialorder %v1923_v33, %v1925_v6  ;;  %v1931_v50 = vcvt.f32.s32 %v1925_v6 }
 0x7d6   : > { %v1910_v10 = vpop.xlane.xlu0 %1909  ;;  %v1927_v14 = vsel %vm1926_vm14, %v1922_v9, inf }
 0x7d7   : > { %1928 = vmin.xlane.f32.xlu1 %v1927_v14  ;;  %vm1911_vm15 = vcmp.eq.f32.partialorder %v1908_v39, %v1910_v10  ;;  %v1901_v39 = vcvt.f32.s32 %v1895_v23  ;;  %v1916_v56 = vcvt.f32.s32 %v1910_v10  ;;  %v1932_v60 = vshll.u32 %v1931_v50, 16 }
 0x7d8   : > { %v1912_v7 = vsel %vm1911_vm15, %v1907_v3, inf  ;;  %vm3494_vm15 = vmmov 0  }
 0x7d9   : > { %1913 = vmin.xlane.f32.xlu0 %v1912_v7  ;;  %v1902_v42 = vshll.u32 %v1901_v39, 16  ;;  %3353 = vmatprep.mubr.msk.f32.mxu0 %vm3494_vm15, %v3492_v11 }
 0x7da   : > { %v1955_v24 = vpop.xlane.xlu1 %1954 }
 0x7db   : > { %vm1956_vm0 = vcmp.eq.f32.partialorder %v1953_v49, %v1955_v24  ;;  %v1961_v20 = vcvt.f32.s32 %v1955_v24 }
 0x7dc   : > { %v1940_v13 = vpop.xlane.xlu0 %1939  ;;  %v1957_v27 = vsel %vm1956_vm0, %v1952_v26, inf }
 0x7dd   : > { %1958 = vmin.xlane.f32.xlu1 %v1957_v27  ;;  %vm1941_vm4 = vcmp.eq.f32.partialorder %v1938_v54, %v1940_v13  ;;  %v1946_v62 = vcvt.f32.s32 %v1940_v13  ;;  %v1962_v1 = vshll.u32 %v1961_v20, 16 }
 0x7de   : > { %v1942_v29 = vsel %vm1941_vm4, %v1937_v25, inf }
 0x7df   : > { %1943 = vmin.xlane.f32.xlu0 %v1942_v29  ;;  %v1947_v6 = vshll.u32 %v1946_v62, 16 }
 0x7e1   : > { %v1985_v31 = vpop.xlane.xlu1 %1984 }
 0x7e2   : > { %vm1986_vm5 = vcmp.eq.f32.partialorder %v1983_v63, %v1985_v31  ;;  %v1991_v3 = vcvt.f32.s32 %v1985_v31 }
 0x7e3   : > { %v1970_v33 = vpop.xlane.xlu0 %1969  ;;  %v1987_v34 = vsel %vm1986_vm5, %v1982_v32, inf }
 0x7e4   : > { %1988 = vmin.xlane.f32.xlu1 %v1987_v34  ;;  %vm1971_vm6 = vcmp.eq.f32.partialorder %v1968_v16, %v1970_v33  ;;  %v1917_v16 = vshll.u32 %v1916_v56, 16  ;;  %v1976_v7 = vcvt.f32.s32 %v1970_v33  ;;  %v1992_v24 = vshll.u32 %v1991_v3, 16 }
 0x7e5   : > { %v1972_v38 = vsel %vm1971_vm6, %v1967_v37, inf }
 0x7e6   : > { %1973 = vmin.xlane.f32.xlu0 %v1972_v38  ;;  %v1977_v28 = vshll.u32 %v1976_v7, 16  ;;  %v2297_v7 = vld [vmem:[%s4288_s2 + $0x158] sm:$0xff] }
 0x858   : > { %v1899_v41 = vpop.xlane.xlu1 %1898 }
 0x859   : > { %v1900_v43 = vcvt.f32.s32 %v1899_v41 }
 0x85a   : > { %v1884_v46 = vpop.xlane.xlu0 %1883 }
 0x85b   : > { %v1903_v48 = vadd.s32 %v1902_v42, %v1900_v43  ;;  %v1885_v49 = vcvt.f32.s32 %v1884_v46  ;;  %v2159_v46 = vsel %vm2147_vm3, %v4017_v57, 0.0 }
 0x85d   : > { %v1888_v54 = vadd.s32 %v1887_v47, %v1885_v49  ;;  %vm1995_vm7 = vcmp.eq.s32.totalorder %v3984_v22, %v1903_v48  ;;  %v2160_v47 = vadd.f32 %v2159_v46, %v4010_v51  ;;  %v2161_v48 = vsel %vm2147_vm3, %v4012_v52, 0.0  ;;  %v2303_v51 = vld [vmem:[%s4288_s2 + $0x188] sm:$0xff]  ;;  %v2302_v52 = vld [vmem:[%s4288_s2 + $0x180] sm:$0xff]  ;;  %v2955_v46 = vld [vmem:[%s4288_s2 + $0x190] ss:$0 sm:$0xff] }
 0x85e   : > { %v2937_v61 = vsel %vm1995_vm7, 1.0, %v3492_v11  ;;  %vm2739_vm3 = vcmp.eq.s32.totalorder %v3984_v22, 0 }
 0x85f   : > { %vm1994_vm8 = vcmp.eq.s32.totalorder %v3984_v22, %v1888_v54  ;;  %v2162_v49 = vadd.f32 %v2161_v48, %v2160_v47 }
 0x860   : > { %v1929_v58 = vpop.xlane.xlu1 %1928  ;;  %v2936_v59 = vsel %vm1994_vm8, 1.0, %v3492_v11 }
 0x861   : > { %v1930_v63 = vcvt.f32.s32 %v1929_v58  ;;  %3325 = vmatprep.mubr.msk.f32.mxu1 %vm649_vm1, %v2936_v59 }
 0x862   : > { %3326 = vmatmul.mubr.msk.f32.vlgmr.msra.gmra.mxu1 %vm649_vm1, %v2937_v61  ;;  %v1914_v17 = vpop.xlane.xlu0 %1913 }
 0x863   : > { %v1933_v21 = vadd.s32 %v1932_v60, %v1930_v63  ;;  %v1915_v23 = vcvt.f32.s32 %v1914_v17  ;;  %3357 = vmatpush3.msra.mxu1 %v2303_v51  ;;  %v2638_v51 = vld [vmem:[%s4288_s2 + $0x260] sm:$0xff] }
 0x864   : > { %3358 = vmatprep.subr.mxu1 %v3492_v11 }
 0x865   : > { %v1918_v18 = vadd.s32 %v1917_v16, %v1915_v23  ;;  %vm1997_vm9 = vcmp.eq.s32.totalorder %v3984_v22, %v1933_v21  ;;  %3359 = vmatpush3.msra.mxu1 %v2302_v52  ;;  %v2636_v52 = vld [vmem:[%s4288_s2 + $0x250] sm:$0xff] }
 0x866   : > { %v1959_v0 = vpop.xlane.xlu1 %1958  ;;  %v2939_v14 = vsel %vm1997_vm9, 1.0, %v3492_v11  ;;  %3360 = vmatprep.subr.mxu1 %v3492_v11 }
 0x867   : > { %v1960_v2 = vcvt.f32.s32 %v1959_v0  ;;  %vm1996_vm10 = vcmp.eq.s32.totalorder %v3984_v22, %v1918_v18  ;;  %v2294_v18 = vld [vmem:[%s4288_s2 + $0x140] sm:$0xff]  ;;  %v2292_v0 = vld [vmem:[%s4288_s2 + $0x130] sm:$0xff] }
 0x868   : > { %v1944_v4 = vpop.xlane.xlu0 %1943  ;;  %v2938_v5 = vsel %vm1996_vm10, 1.0, %v3492_v11 }
 0x869   : > { %v1963_v9 = vadd.s32 %v1962_v1, %v1960_v2  ;;  %v1945_v10 = vcvt.f32.s32 %v1944_v4  ;;  %3328 = vmatprep.mubr.msk.f32.mxu1 %vm649_vm1, %v2938_v5  ;;  %v2291_v1 = vld [vmem:[%s4288_s2 + $0x128] sm:$0xff]  ;;  %v2290_v2 = vld [vmem:[%s4288_s2 + $0x120] sm:$0xff]  ;;  %v2289_v4 = vld [vmem:[%s4288_s2 + $0x118] sm:$0xff] }
 0x86a   : > { %3329 = vmatmul.mubr.msk.f32.gmra.mxu1 %vm649_vm1, %v2939_v14 }
 0x86b   : > { %v1948_v15 = vadd.s32 %v1947_v6, %v1945_v10  ;;  %vm1999_vm11 = vcmp.eq.s32.totalorder %v3984_v22, %v1963_v9 }
 0x86c   : > { %v2941_v27 = vsel %vm1999_vm11, 1.0, %v3492_v11 }
 0x86d   : > { %v1989_v8 = vpop.xlane.xlu1 %1988  ;;  %vm1998_vm12 = vcmp.eq.s32.totalorder %v3984_v22, %v1948_v15 }
 0x86e   : > { %v1990_v26 = vcvt.f32.s32 %v1989_v8  ;;  %v2940_v13 = vsel %vm1998_vm12, 1.0, %v3492_v11  ;;  %v2288_v8 = vld [vmem:[%s4288_s2 + $0x110] sm:$0xff] }
 0x86f   : > { %3331 = vmatprep.mubr.msk.f32.mxu1 %vm649_vm1, %v2940_v13  ;;  %v1974_v25 = vpop.xlane.xlu0 %1973 }
 0x870   : > { %v1993_v29 = vadd.s32 %v1992_v24, %v1990_v26  ;;  %3332 = vmatmul.mubr.msk.f32.gmra.mxu1 %vm649_vm1, %v2941_v27  ;;  %v1975_v30 = vcvt.f32.s32 %v1974_v25  ;;  %v2296_v24 = vld [vmem:[%s4288_s2 + $0x150] sm:$0xff] }
 0x871   : > { %v2464_v27 = vld [vmem:[%s4288_s2 + $0x1d0] sm:$0xff] }
 0x872   : > { %v1978_v31 = vadd.s32 %v1977_v28, %v1975_v30  ;;  %vm2001_vm13 = vcmp.eq.s32.totalorder %v3984_v22, %v1993_v29  ;;  %v2463_v28 = vld [vmem:[%s4288_s2 + $0x1c8] sm:$0xff]  ;;  %v2462_v29 = vld [vmem:[%s4288_s2 + $0x1c0] sm:$0xff]  ;;  %v2461_v30 = vld [vmem:[%s4288_s2 + $0x1b8] sm:$0xff] }
 0x873   : > { %v2943_v33 = vsel %vm2001_vm13, 1.0, %v3492_v11 }
 0x874   : > { %vm2000_vm14 = vcmp.eq.s32.totalorder %v3984_v22, %v1978_v31  ;;  %v2460_v31 = vld [vmem:[%s4288_s2 + $0x1b0] sm:$0xff] }
 0x875   : > { %v2942_v32 = vsel %vm2000_vm14, 1.0, %v3492_v11 }
 0x876   : > { %3334 = vmatprep.mubr.msk.f32.mxu1 %vm649_vm1, %v2942_v32  ;;  %v2459_v32 = vld [vmem:[%s4288_s2 + $0x1a8] sm:$0xff] }
 0x877   : > { %3335 = vmatmul.mubr.msk.f32.gmra.mxu1 %vm649_vm1, %v2943_v33  ;;  %v2458_v33 = vld [vmem:[%s4288_s2 + $0x1a0] sm:$0xff] }
 0x878   : > { %3372 = vmatprep.mubr.msk.f32.mxu1 %vm3494_vm15, %v3492_v11 }
 0x922   : > { %v3327_v34 = vpop.f32.mrf.mxu1 }
 0x924   : > { %v2108_v37 = vpop.f32.mrf.mxu1 }
 0x92a   : > { %v3330_v38 = vpop.f32.mrf.mxu1 }
 0x92c   : > { %v2118_v39 = vpop.f32.mrf.mxu1 }
 0x930   : > { %v3333_v40 = vpop.f32.mrf.mxu1 }
 0x931   : > { %2192 = vrot.lane.b32.xlu1 %v3333_v40, %s3493_s19  ;;  %v2548_v40 = vld [vmem:[%s4288_s2 + $0x200] sm:$0xff] }
 0x932   : > { %v2128_v41 = vpop.f32.mrf.mxu1 }
 0x937   : > { %v3336_v42 = vpop.f32.mrf.mxu1 }
 0x938   : > { %2196 = vrot.lane.b32.xlu0 %v3336_v42, %s3493_s19 }
 0x939   : > { %v2138_v43 = vpop.f32.mrf.mxu1 }
 0x93a   : > { %2194 = vrot.lane.b32.xlu1 %v2138_v43, %s3493_s19 }
 0x93c   : > { %2188 = vrot.lane.b32.xlu0 %v3330_v38, %s3493_s19  ;;  %v2550_v38 = vld [vmem:[%s4288_s2 + $0x210] sm:$0xff] }
 0x93e   : > { %2190 = vrot.lane.b32.xlu1 %v2128_v41, %s3493_s19  ;;  %v2547_v41 = vld [vmem:[%s4288_s2 + $0x1f8] sm:$0xff] }
 0x940   : > { %2184 = vrot.lane.b32.xlu0 %v3327_v34, %s3493_s19  ;;  %v2457_v34 = vld [vmem:[%s4288_s2 + $0x198] sm:$0xff] }
 0x942   : > { %2186 = vrot.lane.b32.xlu1 %v2118_v39, %s3493_s19  ;;  %v2549_v39 = vld [vmem:[%s4288_s2 + $0x208] sm:$0xff] }
 0x946   : > { %2182 = vrot.lane.b32.xlu1 %v2108_v37, %s3493_s19  ;;  %v2551_v37 = vld [vmem:[%s4288_s2 + $0x218] sm:$0xff] }
 0x95f   : > { %2163 = vadd.xlane.f32.xlu0 %v2162_v49 }
 0x9a3   : > { %v2193_v50 = vpop.permute.xlu1 %2192 }
 0x9aa   : > { %v2197_v54 = vpop.permute.xlu0 %2196 }
 0x9ab   : > { %v2213_v56 = vsel %vm372_vm2, %v3925_v19, %v2197_v54  ;;  %v2211_v19 = vsel %vm372_vm2, %v3906_v53, %v2193_v50  ;;  %v2300_v53 = vld [vmem:[%s4288_s2 + $0x170] sm:$0xff] }
 0x9ac   : > { %3338 = vmatpush3.msra.mxu0 %v2213_v56  ;;  %v2195_v58 = vpop.permute.xlu1 %2194  ;;  %v2546_v56 = vld [vmem:[%s4288_s2 + $0x1f0] sm:$0xff] }
 0x9ad   : > { %v2212_v59 = vsel %vm372_vm2, %v3929_v12, %v2195_v58  ;;  %3339 = vmatprep.subr.mxu0 %v3492_v11  ;;  %v2301_v12 = vld [vmem:[%s4288_s2 + $0x178] sm:$0xff]  ;;  %v2545_v58 = vld [vmem:[%s4288_s2 + $0x1e8] sm:$0xff] }
 0x9ae   : > { %v2189_v57 = vpop.permute.xlu0 %2188  ;;  %3340 = vmatpush3.msra.mxu0 %v2212_v59  ;;  %3361 = vmatpush3.msra.mxu1 %v2301_v12  ;;  %v2544_v59 = vld [vmem:[%s4288_s2 + $0x1e0] sm:$0xff] }
 0x9af   : > { %3341 = vmatprep.subr.mxu0 %v3492_v11  ;;  %v2209_v63 = vsel %vm372_vm2, %v3896_v44, %v2189_v57  ;;  %3362 = vmatprep.subr.mxu1 %v3492_v11  ;;  %v2298_v44 = vld [vmem:[%s4288_s2 + $0x160] sm:$0xff]  ;;  %v2637_v57 = vld [vmem:[%s4288_s2 + $0x258] sm:$0xff] }
 0x9b0   : > { %3342 = vmatpush3.msra.mxu0 %v2211_v19  ;;  %v2191_v60 = vpop.permute.xlu1 %2190  ;;  %3363 = vmatpush3.msra.mxu1 %v2300_v53  ;;  %v2635_v19 = vld [vmem:[%s4288_s2 + $0x248] sm:$0xff]  ;;  %v2634_v12 = vld [vmem:[%s4288_s2 + $0x240] sm:$0xff] }
 0x9b1   : > { %v2210_v61 = vsel %vm372_vm2, %v3908_v55, %v2191_v60  ;;  %3343 = vmatprep.subr.mxu0 %v3492_v11  ;;  %v2299_v55 = vld [vmem:[%s4288_s2 + $0x168] sm:$0xff]  ;;  %3364 = vmatprep.subr.mxu1 %v3492_v11  ;;  %v2956_v60 = vld [vmem:[%s4288_s2 + $0x1d8] ss:$0 sm:$0xff] }
 0x9b2   : > { %3344 = vmatpush3.msra.mxu0 %v2210_v61  ;;  %v2185_v17 = vpop.permute.xlu0 %2184  ;;  %3365 = vmatpush3.msra.mxu1 %v2299_v55 }
 0x9b3   : > { %3345 = vmatprep.subr.mxu0 %v3492_v11  ;;  %v2207_v21 = vsel %vm372_vm2, %v3887_v35, %v2185_v17  ;;  %3366 = vmatprep.subr.mxu1 %v3492_v11  ;;  %v2295_v35 = vld [vmem:[%s4288_s2 + $0x148] sm:$0xff]  ;;  %v2633_v17 = vld [vmem:[%s4288_s2 + $0x238] sm:$0xff] }
 0x9b4   : > { %3346 = vmatpush3.msra.mxu0 %v2209_v63  ;;  %v2187_v16 = vpop.permute.xlu1 %2186  ;;  %3367 = vmatpush3.msra.mxu1 %v2298_v44  ;;  %v2958_v44 = vld [vmem:[%s4288_s2 + $0x220] ss:$0 sm:$0xff] }
 0x9b5   : > { %v2208_v20 = vsel %vm372_vm2, %v3898_v45, %v2187_v16  ;;  %3347 = vmatprep.subr.mxu0 %v3492_v11  ;;  %v2214_v45 = vld [vmem:[%s4288_s2 + $0x108] sm:$0xf]  ;;  %3368 = vmatprep.subr.mxu1 %v3492_v11  ;;  %v2632_v16 = vld [vmem:[%s4288_s2 + $0x230] sm:$0xff] }
 0x9b6   : > { %3348 = vmatpush3.msra.mxu0 %v2208_v20  ;;  %3369 = vmatpush3.msra.mxu1 %v2297_v7  ;;  %v2631_v20 = vld [vmem:[%s4288_s2 + $0x228] sm:$0xff] }
 0x9b7   : > { %3349 = vmatprep.subr.mxu0 %v3492_v11  ;;  %3370 = vmatprep.subr.mxu1 %v3492_v11 }
 0x9b8   : > { %3350 = vmatpush3.msra.mxu0 %v2207_v21  ;;  %v2183_v23 = vpop.permute.xlu1 %2182  ;;  %3371 = vmatpush3.msra.mxu1 %v2296_v24 }
 0x9b9   : > { %v2206_v62 = vsel %vm372_vm2, %v3889_v36, %v2183_v23  ;;  %3351 = vmatprep.subr.mxu0 %v3492_v11  ;;  %v2293_v36 = vld [vmem:[%s4288_s2 + $0x138] sm:$0xff]  ;;  %3394 = vmatprep.subr.mxu1 %v3492_v11  ;;  %vm2720_vm2 = vcmask 1024  }
 0x9ba   : > { %3352 = vmatpush3.msra.mxu0 %v2206_v62 }
 0x9bb   : > { %3354 = vmatmul.mubr.msk.f32.vlgmr.msra.gmra.mxu0 %vm649_vm1, %v2214_v45  ;;  %3375 = vmatprep.subr.mxu0 %v3492_v11 }
 0x9bc   : > { %3376 = vmatpush3.msra.mxu0 %v2295_v35  ;;  %3391 = vmatprep.mubr.msk.f32.mxu0 %vm3494_vm15, %v3492_v11  ;;  %v3495_v35 = vmov 0  }
 0x9bd   : > { %3377 = vmatprep.subr.mxu0 %v3492_v11  ;;  %3467 = vset.pattern.permute.xlu0 %v3495_v35 }
 0x9be   : > { %3378 = vmatpush3.msra.mxu0 %v2294_v18 }
 0x9bf   : > { %3379 = vmatprep.subr.mxu0 %v3492_v11 }
 0x9c0   : > { %3380 = vmatpush3.msra.mxu0 %v2293_v36  ;;  %v2717_v36 = vld [vmem:[%s228_s13] sm:$0x3] }
 0x9c1   : > { %3381 = vmatprep.subr.mxu0 %v3492_v11 }
 0x9c2   : > { %3382 = vmatpush3.msra.mxu0 %v2292_v0 }
 0x9c3   : > { %3383 = vmatprep.subr.mxu0 %v3492_v11 }
 0x9c4   : > { %3384 = vmatpush3.msra.mxu0 %v2291_v1 }
 0x9c5   : > { %3385 = vmatprep.subr.mxu0 %v3492_v11 }
 0x9c6   : > { %3386 = vmatpush3.msra.mxu0 %v2290_v2 }
 0x9c7   : > { %3387 = vmatprep.subr.mxu0 %v3492_v11 }
 0x9c8   : > { %3388 = vmatpush3.msra.mxu0 %v2289_v4 }
 0x9c9   : > { %3389 = vmatprep.subr.mxu0 %v3492_v11 }
 0x9ca   : > { %3390 = vmatpush3.msra.mxu0 %v2288_v8 }
 0x9cb   : > { %3413 = vmatprep.subr.mxu0 %v3492_v11 }
 0x9e8   : > { %v2164_v5 = vpop.xlane.xlu0 %2163 }
 0x9e9   : > { %v2165_v6 = vrot.slane %v2164_v5, 4 }
 0x9eb   : > { %v2166_v9 = vadd.f32 %v2165_v6, %v2164_v5 }
 0x9ed   : > { %v2167_v10 = vrot.slane %v2166_v9, 2 }
 0x9ef   : > { %v2168_v14 = vadd.f32 %v2167_v10, %v2166_v9 }
 0x9f1   : > { %v2169_v3 = vrot.slane %v2168_v14, 1 }
 0x9f3   : > { %v2170_v15 = vadd.f32 %v2169_v3, %v2168_v14 }
 0x9f5   : > { %3451 = vpush %v2170_v15 }
 0xa26   : > { %s3452_s18 = spop %3451 }
 0xa27   : > { %s2172_s19 = smul.f32 2.0, %s3452_s18 }
 0xa29   : > { %s2173_s20 = ssub.f32 128.0, %s2172_s19 }
 0xa2b   : > { %s2734_s21 = smul.f32 1.25, %s2173_s20 }
 0xa2d   : > { %s2737_s22 = smul.f32 0.0009765625, %s2734_s21 }
 0xa7b   : > { %v2284_v26 = vpop.f32.mrf.mxu0 }
 0xa7c   : > { %v2305_v13 = vrot.slane %v2284_v26, 2  ;;  %3392 = vmatmul.mubr.msk.f32.vlgmr.msra.gmra.mxu0 %vm649_vm1, %v2284_v26 }
 0xa7d   : > { %v3355_v25 = vpop.f32.mrf.mxu0  ;;  %3429 = vmatprep.mubr.msk.f32.mxu0 %vm3494_vm15, %v3492_v11  ;;  %3414 = vmatpush3.msra.mxu0 %v2551_v37 }
 0xa7e   : > { %3373 = vmatmul.mubr.msk.f32.vlgmr.msra.gmra.mxu1 %vm649_vm1, %v2305_v13  ;;  %3415 = vmatprep.subr.mxu0 %v3492_v11 }
 0xa7f   : > { %3395 = vmatpush3.msra.mxu1 %v2464_v27  ;;  %3410 = vmatprep.mubr.msk.f32.mxu1 %vm3494_vm15, %v3492_v11 }
 0xa80   : > { %3396 = vmatprep.subr.mxu1 %v3492_v11  ;;  %3416 = vmatpush3.msra.mxu0 %v2550_v38 }
 0xa81   : > { %3397 = vmatpush3.msra.mxu1 %v2463_v28  ;;  %3417 = vmatprep.subr.mxu0 %v3492_v11 }
 0xa82   : > { %3398 = vmatprep.subr.mxu1 %v3492_v11  ;;  %3418 = vmatpush3.msra.mxu0 %v2549_v39 }
 0xa83   : > { %3399 = vmatpush3.msra.mxu1 %v2462_v29  ;;  %3419 = vmatprep.subr.mxu0 %v3492_v11 }
 0xa84   : > { %3400 = vmatprep.subr.mxu1 %v3492_v11  ;;  %3420 = vmatpush3.msra.mxu0 %v2548_v40 }
 0xa85   : > { %3401 = vmatpush3.msra.mxu1 %v2461_v30  ;;  %3421 = vmatprep.subr.mxu0 %v3492_v11 }
 0xa86   : > { %3402 = vmatprep.subr.mxu1 %v3492_v11  ;;  %3422 = vmatpush3.msra.mxu0 %v2547_v41 }
 0xa87   : > { %3403 = vmatpush3.msra.mxu1 %v2460_v31  ;;  %3423 = vmatprep.subr.mxu0 %v3492_v11 }
 0xa88   : > { %3404 = vmatprep.subr.mxu1 %v3492_v11  ;;  %3424 = vmatpush3.msra.mxu0 %v2546_v56 }
 0xa89   : > { %3405 = vmatpush3.msra.mxu1 %v2459_v32  ;;  %3425 = vmatprep.subr.mxu0 %v3492_v11 }
 0xa8a   : > { %3406 = vmatprep.subr.mxu1 %v3492_v11  ;;  %3426 = vmatpush3.msra.mxu0 %v2545_v58 }
 0xa8b   : > { %3407 = vmatpush3.msra.mxu1 %v2458_v33  ;;  %3427 = vmatprep.subr.mxu0 %v3492_v11 }
 0xa8c   : > { %3408 = vmatprep.subr.mxu1 %v3492_v11  ;;  %3428 = vmatpush3.msra.mxu0 %v2544_v59 }
 0xa8d   : > { %3409 = vmatpush3.msra.mxu1 %v2457_v34 }
 0xa8e   : > { %3432 = vmatprep.subr.mxu1 %v3492_v11 }
 0xb3c   : > { %v2446_v42 = vpop.f32.mrf.mxu0 }
 0xb3e   : > { %v2374_v43 = vpop.f32.mrf.mxu1  ;;  %v3393_v47 = vpop.f32.mrf.mxu0 }
 0xb3f   : > { %v2447_v48 = vadd.f32 %v2446_v42, %v2374_v43 }
 0xb40   : > { %v3374_v49 = vpop.f32.mrf.mxu1 }
 0xb41   : > { %v2455_v50 = vadd.f32 %v2955_v46, %v2447_v48 }
 0xb43   : > { %v2456_v54 = vmax.f32 %v2455_v50, 0.0 }
 0xb45   : > { %3411 = vmatmul.mubr.msk.f32.vlgmr.msra.gmra.mxu1 %vm649_vm1, %v2456_v54 }
 0xb46   : > { %3448 = vmatprep.mubr.msk.f32.mxu1 %vm3494_vm15, %v3492_v11  ;;  %3433 = vmatpush3.msra.mxu1 %v2638_v51 }
 0xb47   : > { %3434 = vmatprep.subr.mxu1 %v3492_v11 }
 0xb48   : > { %3435 = vmatpush3.msra.mxu1 %v2637_v57 }
 0xb49   : > { %3436 = vmatprep.subr.mxu1 %v3492_v11 }
 0xb4a   : > { %3437 = vmatpush3.msra.mxu1 %v2636_v52 }
 0xb4b   : > { %3438 = vmatprep.subr.mxu1 %v3492_v11 }
 0xb4c   : > { %3439 = vmatpush3.msra.mxu1 %v2635_v19 }
 0xb4d   : > { %3440 = vmatprep.subr.mxu1 %v3492_v11 }
 0xb4e   : > { %3441 = vmatpush3.msra.mxu1 %v2634_v12 }
 0xb4f   : > { %3442 = vmatprep.subr.mxu1 %v3492_v11 }
 0xb50   : > { %3443 = vmatpush3.msra.mxu1 %v2633_v17 }
 0xb51   : > { %3444 = vmatprep.subr.mxu1 %v3492_v11 }
 0xb52   : > { %3445 = vmatpush3.msra.mxu1 %v2632_v16 }
 0xb53   : > { %3446 = vmatprep.subr.mxu1 %v3492_v11  ;;  %v2960_v11 = vld [vmem:[%s4288_s2 + $0x268] ss:$0 sm:$0xff] }
 0xb54   : > { %3447 = vmatpush3.msra.mxu1 %v2631_v20 }
 0xc05   : > { %v2539_v61 = vpop.f32.mrf.mxu1 }
 0xc06   : > { %v2540_v53 = vadd.f32 %v2956_v60, %v2539_v61 }
 0xc07   : > { %v3412_v63 = vpop.f32.mrf.mxu1 }
 0xc08   : > { %v2543_v55 = vmax.f32 %v2540_v53, 0.0 }
 0xc0a   : > { %3430 = vmatmul.mubr.msk.f32.vlgmr.msra.gmra.mxu0 %vm649_vm1, %v2543_v55 }
 0xcca   : > { %v2626_v21 = vpop.f32.mrf.mxu0 }
 0xccb   : > { %v2627_v23 = vadd.f32 %v2958_v44, %v2626_v21 }
 0xccc   : > { %v3431_v45 = vpop.f32.mrf.mxu0 }
 0xccd   : > { %v2630_v62 = vmax.f32 %v2627_v23, 0.0 }
 0xccf   : > { %3449 = vmatmul.mubr.msk.f32.vlgmr.msra.gmra.mxu1 %vm649_vm1, %v2630_v62  ;;  %vm2740_vm1 = vcmp.eq.s32.totalorder %v3984_v22, 1 }
 0xd8f   : > { %v2713_v18 = vpop.f32.mrf.mxu1 }
 0xd90   : > { %v2714_v0 = vadd.f32 %v2960_v11, %v2713_v18 }
 0xd91   : > { %v3450_v1 = vpop.f32.mrf.mxu1 }
 0xd92   : > { %v2718_v2 = vsub.f32 %v2714_v0, %v2717_v36  ;;  %2745 = vperm.xlu0 %3467, %v2714_v0  }
 0xd94   : > { %v2719_v4 = vmul.f32 %v2718_v2, %v2718_v2 }
 0xd96   : > { %v2721_v5 = vsel %vm2720_vm2, %v2719_v4, 0.0 }
 0xd97   : > { %2722 = vadd.xlane.f32.xlu1 %v2721_v5 }
 0xe0d   : > { %v2746_v24 = vpop.permute.xlu0 %2745 }
 0xe20   : > { %v2723_v6 = vpop.xlane.xlu1 %2722 }
 0xe21   : > { %v2724_v9 = vrot.slane %v2723_v6, 4 }
 0xe23   : > { %v2725_v10 = vadd.f32 %v2724_v9, %v2723_v6 }
 0xe25   : > { %v2726_v14 = vrot.slane %v2725_v10, 2 }
 0xe27   : > { %v2727_v3 = vadd.f32 %v2726_v14, %v2725_v10 }
 0xe29   : > { %v2728_v15 = vrot.slane %v2727_v3, 1 }
 0xe2b   : > { %v2729_v7 = vadd.f32 %v2728_v15, %v2727_v3 }
 0xe2d   : > { %3453 = vpush %v2729_v7 }
 0xe5e   : > { %s3454_s23 = spop %3453 }
 0xe5f   : > { %s2733_s24 = smul.f32 0.5, %s3454_s23 }
 0xe61   : > { %s2738_s25 = sadd.f32 %s2737_s22, %s2733_s24 }
 0xe63   : > { %v2741_v8 = vstv %s2738_s25 }
 0xe64   : > { %v2742_v26 = vsel %vm2740_vm1, %v2741_v8, 0.0 }
 0xe65   : > { %v2748_v13 = vsel %vm2739_vm3, %v2746_v24, %v2742_v26 }
 0xe66   : > { %2749 = vst [vmem:[%s232_s28] sm:$0x3] %v2748_v13 }
 0xe67 PF: > { %s14_s15 = sadd.s32 1, %s3490_s15  }
 0xe68   : > { %p11_p4 = scmp.ge.s32.totalorder %s14_s15, 4  }
 0xe6a   :  { %13 = sbr.rel (!%p11_p4) target bundleno = 1 (0x1), region = 72 }

</bundles_post_ra>
